<compile_context>
chip_gen: v6e
topology: v6e:2x2x1
jax: 0.10.0
libtpu: 0.0.40
codegen_flags: <defaults>
</compile_context>

<pallas_src>
import numpy as np
import jax
import jax.numpy as jnp
from jax.experimental import pallas as pl
from jax.experimental.pallas import tpu as pltpu

# ---------------------------------------------------------------------------
# Static geometry of the Hexagon108 cluster (implied by the module's indexing)
# ---------------------------------------------------------------------------
H, W = 12, 13            # input / output spatial size
HP, WP = H + 2, W + 2    # zero-padded size (14, 15)
K_IN = 256               # lane-aligned flattened-input length (156 -> 256)
OUT_LANES = 256          # stride-15 output layout padded to 2 full vregs

# Active taps of the hexagonal 3x3 kernel (corners (0,2) and (2,0) are masked out)
TAPS = ((0, 0), (0, 1), (1, 0), (1, 1), (1, 2), (2, 1), (2, 2))
TAP_OFFSETS = tuple(dy * WP + dx for dy, dx in TAPS)
N_TAPS = len(TAPS)


def _build_wrap_gather():
    """Resolve ZeroPad2d + the in-place wrap copies into a constant gather.

    Returns src (HP*WP,) int32 with the flat input index feeding each padded
    position, and mask (HP*WP,) float32 (0 where the padded value stays zero).
    """
    src = -np.ones((HP, WP), dtype=np.int64)          # -1 == stays zero
    for y in range(1, H + 1):                          # default interior mapping
        for x in range(1, W + 1):
            src[y, x] = (y - 1) * W + (x - 1)

    def s(y, x, r, c):
        src[y, x] = r * W + c

    for k in range(7):              # x[0, 1:8]    = x[12, 7:14]
        s(0, 1 + k, 11, 6 + k)
    for i in range(3):              # x[i, 8+i]    = x[6+i, 2+i]
        s(i, 8 + i, 5 + i, 1 + i)
    for i in range(4):              # x[3+i, 10+i] = x[9+i, 4+i]
        s(3 + i, 10 + i, 8 + i, 3 + i)
    for i in range(3):              # x[7+i, 13]   = x[1+i, 1]
        s(7 + i, 13, i, 0)
    for i in range(3):              # x[10+i, 14]  = x[4+i, 2]
        s(10 + i, 14, 3 + i, 1)
    for i in range(8):              # x[13, 7+i]   = x[1, 1+i]
        s(13, 7 + i, 0, i)
    for i in range(4):              # x[9+i, 3+i]  = x[3+i, 9+i]
        s(9 + i, 3 + i, 2 + i, 8 + i)
    # x[6+i, 1+i] = x[i, 7+i] ; i=0 reads the value written by the first copy
    s(6, 1, 11, 12)
    s(7, 2, 0, 7)
    s(8, 3, 1, 8)
    for i in range(2):              # x[4+i, 1]    = x[10+i, 13]
        s(4 + i, 1, 9 + i, 12)
    for i in range(4):              # x[i, 0]      = x[6+i, 12]
        s(i, 0, 5 + i, 11)

    src = src.reshape(-1)
    mask = (src >= 0).astype(np.float32)
    return np.where(src < 0, 0, src).astype(np.int32), mask


def _build_keep_mask():
    """(12, 13) keep-mask of the 108-site hexagon (48 output positions zeroed)."""
    keep = np.ones((H, W), dtype=np.float32)
    for i in range(5):
        for j in range(8 + i, 13):
            keep[i, j] = 0.0
    for i in range(4):
        keep[2 + i, 9 + i] = 0.0
    keep[6:9, 12] = 0.0
    for i in range(6):
        for j in range(i + 1):
            keep[6 + i, j] = 0.0
    for i in range(3):
        keep[5 + i, i] = 0.0
    keep[3:5, 0] = 0.0
    return keep


def _build_tables():
    """Fold pad + wrap + tap shifts + output hexagon mask into one 0/1 matrix.

    g[m, t*256 + l] = 1  iff  wrapped_padded_x[:, l + off_t] == x_flat[:, m]
    and output lane l is a kept hexagon position; all other entries are 0.
    So   pv = x_flat_padded @ g   yields, per input channel, the 7 pre-shifted
    (and output-masked) tap windows side by side as 7 x 256-lane blocks.
    """
    src, wrap = _build_wrap_gather()
    keep = _build_keep_mask()

    out_mask = np.zeros((OUT_LANES,), dtype=np.float32)
    for oy in range(H):
        out_mask[oy * WP: oy * WP + W] = keep[oy]

    g = np.zeros((K_IN, N_TAPS * OUT_LANES), dtype=np.float32)
    for t, off in enumerate(TAP_OFFSETS):
        for l in range(OUT_LANES):
            if out_mask[l] == 0.0:
                continue
            p = l + off
            if p >= HP * WP or wrap[p] == 0.0:
                continue
            g[src[p], t * OUT_LANES + l] = 1.0
    return g, out_mask


_GATHER_TAP_MATRIX, _OUT_MASK = _build_tables()


# ---------------------------------------------------------------------------
# Fused kernel: gather/wrap (MXU) + hexagonal 3x3 conv (7 MXU tap matmuls)
#               + mask-premultiplied bias, B samples per grid step.
# ---------------------------------------------------------------------------
def _hex_conv_kernel(x_ref, g_ref, w_ref, b_ref, o_ref, xpad_ref):
    # x_ref   : (B, Cin, 156)        raw flattened inputs for B samples
    # g_ref   : (256, 7*256)         constant pad+wrap+tap-shift+out-mask matrix
    # w_ref   : (7, Cout, CinP)      hexagon-masked conv weights per tap (Cin zero-padded)
    # b_ref   : (Cout, 256)          bias pre-multiplied by the hexagon output mask
    # o_ref   : (B, Cout, 256)       output on the stride-15 lane grid
    # xpad_ref: (CinP, 256) VMEM     zeroed staging buffer -> all dot dims aligned
    c_in = x_ref.shape[1]

    # Zero once per grid step; per-sample stores only touch [:Cin, :156], so the
    # Cin / lane padding regions used as matmul K-padding stay exactly zero.
    xpad_ref[...] = jnp.zeros_like(xpad_ref)

    @pl.loop(0, x_ref.shape[0])
    def _per_sample(b):
        xpad_ref[:c_in, : H * W] = x_ref[b]

        # pad + hexagonal wrap + all 7 tap windows + output mask as ONE matmul:
        #   pv[ci, t*256 + l] = wrapped_padded_x[ci, l + off_t] * out_mask[l]
        pv = jnp.dot(xpad_ref[...], g_ref[...], preferred_element_type=jnp.float32)

        # Hexagonal 3x3 conv: 7 tap matmuls on the MXU, f32 accumulation.
        # acc starts from the mask-premultiplied bias (no trailing +b / *mask).
        acc = b_ref[...]
        for t in range(N_TAPS):
            acc = acc + jnp.dot(
                w_ref[t],
                pv[:, t * OUT_LANES:(t + 1) * OUT_LANES],   # whole-vreg selection
                preferred_element_type=jnp.float32,
            )
        o_ref[b] = acc


@jax.jit
def hexagon108_conv2d(x, weight, bias):
    """Pallas forward of Hexagon108Conv2d.

    x:      (N, Cin, 12, 13) float32
    weight: (Cout, Cin, 3, 3) float32 (torch Conv2d layout; hexagon mask applied here)
    bias:   (Cout,)          float32
    returns (N, Cout, 12, 13) float32
    """
    n, c_in, h, w = x.shape
    assert (h, w) == (H, W), "Hexagon108Conv2d implies a 12x13 spatial grid"
    c_out = weight.shape[0]
    cip = ((c_in + 7) // 8) * 8          # Cin padded to a full sublane group

    # ---- tiny weight-side prep (negligible vs. activation traffic) ----------
    dys = np.array([t[0] for t in TAPS])
    dxs = np.array([t[1] for t in TAPS])
    wt = jnp.transpose(weight[:, :, dys, dxs].astype(jnp.float32), (2, 0, 1))  # (7,Cout,Cin)
    wt = jnp.pad(wt, ((0, 0), (0, 0), (0, cip - c_in)))                        # (7,Cout,CinP)
    bm = bias.astype(jnp.float32)[:, None] * jnp.asarray(_OUT_MASK)[None, :]   # (Cout,256)
    g = jnp.asarray(_GATHER_TAP_MATRIX)                                        # (256,1792)

    # ---- batch blocking: amortise per-step overhead, keep >=2 grid steps ----
    # (>=2 steps keeps both v7x TensorCores busy; raise the cap towards 16-32
    #  for large N / larger channel counts.)
    bs = max(1, min(8, (n + 1) // 2))
    n_pad = -(-n // bs) * bs
    x3 = x.astype(jnp.float32).reshape(n, c_in, H * W)        # free reshape
    if n_pad != n:
        x3 = jnp.pad(x3, ((0, n_pad - n), (0, 0), (0, 0)))

    out = pl.pallas_call(
        _hex_conv_kernel,
        out_shape=jax.ShapeDtypeStruct((n_pad, c_out, OUT_LANES), jnp.float32),
        grid=(n_pad // bs,),
        in_specs=[
            pl.BlockSpec((bs, c_in, H * W), lambda i: (i, 0, 0)),
            pl.BlockSpec((K_IN, N_TAPS * OUT_LANES), lambda i: (0, 0)),   # resident
            pl.BlockSpec((N_TAPS, c_out, cip), lambda i: (0, 0, 0)),      # resident
            pl.BlockSpec((c_out, OUT_LANES), lambda i: (0, 0)),           # resident
        ],
        out_specs=pl.BlockSpec((bs, c_out, OUT_LANES), lambda i: (i, 0, 0)),
        scratch_shapes=[pltpu.VMEM((cip, K_IN), jnp.float32)],
        compiler_params=pltpu.CompilerParams(dimension_semantics=("parallel",)),
    )(x3, g, wt, bm)

    # ONE small crop: stride-15 lane grid -> (12, 13); XLA fuses slice+reshape+slice.
    # TODO(synk): the module's in-place wrap scatter has no in-kernel scatter
    # equivalent; it is resolved statically into the constant gather matrix g.
    return out[:n, :, : H * WP].reshape(n, c_out, H, WP)[..., :W]


# ---------------------------------------------------------------------------
# Plain-JAX reference: literal transcription of the PyTorch forward
# ---------------------------------------------------------------------------
def ref_forward(x, weight, bias):
    xp = jnp.pad(x, ((0, 0), (0, 0), (1, 1), (1, 1)))
    xp = xp.at[:, :, 0, 1:8].set(xp[:, :, 12, 7:14])
    for i in range(3):
        xp = xp.at[:, :, i, 8 + i].set(xp[:, :, 6 + i, 2 + i])
    for i in range(4):
        xp = xp.at[:, :, 3 + i, 10 + i].set(xp[:, :, 9 + i, 4 + i])
    for i in range(3):
        xp = xp.at[:, :, 7 + i, 13].set(xp[:, :, 1 + i, 1])
    for i in range(3):
        xp = xp.at[:, :, 10 + i, 14].set(xp[:, :, 4 + i, 2])
    for i in range(8):
        xp = xp.at[:, :, 13, 7 + i].set(xp[:, :, 1, 1 + i])
    for i in range(4):
        xp = xp.at[:, :, 9 + i, 3 + i].set(xp[:, :, 3 + i, 9 + i])
    for i in range(3):
        xp = xp.at[:, :, 6 + i, 1 + i].set(xp[:, :, 0 + i, 7 + i])
    for i in range(2):
        xp = xp.at[:, :, 4 + i, 1].set(xp[:, :, 10 + i, 13])
    for i in range(4):
        xp = xp.at[:, :, 0 + i, 0].set(xp[:, :, 6 + i, 12])

    hex_mask = np.ones((3, 3), dtype=np.float32)
    hex_mask[0, 2] = 0.0
    hex_mask[2, 0] = 0.0
    y = jax.lax.conv_general_dilated(
        xp, weight * hex_mask[None, None], (1, 1), "VALID",
        dimension_numbers=("NCHW", "OIHW", "NCHW"),
        precision=jax.lax.Precision.HIGHEST,
    ) + bias[None, :, None, None]

    for i in range(5):
        for j in range(8 + i, 13):
            y = y.at[:, :, i, j].set(0.0)
    for i in range(4):
        y = y.at[:, :, 2 + i, 9 + i].set(0.0)
    y = y.at[:, :, 6:9, 12].set(0.0)
    for i in range(6):
        for j in range(i + 1):
            y = y.at[:, :, 6 + i, j].set(0.0)
    for i in range(3):
        y = y.at[:, :, 5 + i, 0 + i].set(0.0)
    y = y.at[:, :, 3:5, 0].set(0.0)
    return y


# ---------------------------------------------------------------------------
if __name__ == "__main__":
    # Small shapes consistent with the module; N=5 exercises the batch-blocked
    # grid (B=3 samples/step, 2 grid steps) including the batch-pad path, and
    # Cin != Cout guards against any layout/transposition mistakes.
    N, C_IN, C_OUT = 5, 4, 6
    key = jax.random.PRNGKey(0)
    kx, kw, kb = jax.random.split(key, 3)

    x = jax.random.normal(kx, (N, C_IN, H, W), jnp.float32)
    weight = 0.2 * jax.random.normal(kw, (C_OUT, C_IN, 3, 3), jnp.float32)
    bias = 0.2 * jax.random.normal(kb, (C_OUT,), jnp.float32)

    out = jax.block_until_ready(hexagon108_conv2d(x, weight, bias))
    ref = jax.block_until_ready(ref_forward(x, weight, bias))
    np.testing.assert_allclose(np.asarray(out), np.asarray(ref), rtol=5e-4, atol=5e-4)

    print("KERNEL_OK")
</pallas_src>

<mosaic_0001>
module attributes {stable_mosaic.version = 11 : i64} {
  func.func @_hex_conv_kernel(%arg0: i32, %arg1: memref<3x4x156xf32, #tpu.memory_space<vmem>>, %arg2: memref<256x1792xf32, #tpu.memory_space<vmem>>, %arg3: memref<7x6x8xf32, #tpu.memory_space<vmem>>, %arg4: memref<6x256xf32, #tpu.memory_space<vmem>>, %arg5: memref<3x6x256xf32, #tpu.memory_space<vmem>>, %arg6: memref<8x256xf32, #tpu.memory_space<vmem>>) attributes {dimension_semantics = [#tpu.dimension_semantics<parallel>], iteration_bounds = array<i64: 2>, scalar_prefetch = 0 : i64, scratch_operands = 1 : i64, tpu.core_type = #tpu.core_type<tc>, window_params = [{transform_indices = @transform_0, window_bounds = array<i64: 3, 4, 156>}, {pipeline_mode = #tpu.pipeline_mode<synchronous>, transform_indices = @transform_1, window_bounds = array<i64: 256, 1792>}, {pipeline_mode = #tpu.pipeline_mode<synchronous>, transform_indices = @transform_2, window_bounds = array<i64: 7, 6, 8>}, {pipeline_mode = #tpu.pipeline_mode<synchronous>, transform_indices = @transform_3, window_bounds = array<i64: 6, 256>}, {transform_indices = @transform_4, window_bounds = array<i64: 3, 6, 256>}]} {
    %cst = arith.constant 0.000000e+00 : f32
    %0 = vector.broadcast %cst : f32 to vector<8x256xf32>
    %c0 = arith.constant 0 : index
    %c0_0 = arith.constant 0 : index
    %1 = vector.load %arg6[%c0, %c0_0] : memref<8x256xf32, #tpu.memory_space<vmem>>, vector<8x256xf32>
    tpu.vector_store %arg6[%c0, %c0_0], %0 {strides = array<i32>} : memref<8x256xf32, #tpu.memory_space<vmem>>, vector<8x256xf32>,
    %c0_i32 = arith.constant 0 : i32
    %c3_i32 = arith.constant 3 : i32
    %2 = arith.addi %c0_i32, %c3_i32 : i32
    %c1_i32 = arith.constant 1 : i32
    scf.for %arg7 = %c0_i32 to %2 step %c1_i32  : i32 {
      %c1_i32_2 = arith.constant 1 : i32
      %3 = arith.muli %arg7, %c1_i32_2 : i32
      %c0_i32_3 = arith.constant 0 : i32
      %4 = arith.addi %c0_i32_3, %3 : i32
      %5 = arith.index_cast %4 : i32 to index
      %c0_4 = arith.constant 0 : index
      %c0_5 = arith.constant 0 : index
      %6 = vector.load %arg1[%5, %c0_4, %c0_5] : memref<3x4x156xf32, #tpu.memory_space<vmem>>, vector<1x4x156xf32>
      %7 = vector.shape_cast %6 : vector<1x4x156xf32> to vector<4x156xf32>
      %c0_6 = arith.constant 0 : index
      %c0_7 = arith.constant 0 : index
      %8 = vector.load %arg6[%c0_6, %c0_7] : memref<8x256xf32, #tpu.memory_space<vmem>>, vector<4x156xf32>
      tpu.vector_store %arg6[%c0_6, %c0_7], %7 {strides = array<i32>} : memref<8x256xf32, #tpu.memory_space<vmem>>, vector<4x156xf32>,
      %c0_8 = arith.constant 0 : index
      %c0_9 = arith.constant 0 : index
      %9 = vector.load %arg6[%c0_8, %c0_9] : memref<8x256xf32, #tpu.memory_space<vmem>>, vector<8x256xf32>
      %c0_10 = arith.constant 0 : index
      %c0_11 = arith.constant 0 : index
      %10 = vector.load %arg2[%c0_10, %c0_11] : memref<256x1792xf32, #tpu.memory_space<vmem>>, vector<256x1792xf32>
      %cst_12 = arith.constant dense<0.000000e+00> : vector<8x1792xf32>
      %11 = tpu.matmul %9, %10, %cst_12 {dimension_numbers = #tpu.dot_dimension_numbers<[1], [0], [0], [1], [0, 0, 1, 1], [], []>} : vector<8x256xf32>, vector<256x1792xf32>, vector<8x1792xf32> -> vector<8x1792xf32>
      %c0_13 = arith.constant 0 : index
      %c0_14 = arith.constant 0 : index
      %12 = vector.load %arg4[%c0_13, %c0_14] : memref<6x256xf32, #tpu.memory_space<vmem>>, vector<6x256xf32>
      %c0_15 = arith.constant 0 : index
      %c0_16 = arith.constant 0 : index
      %c0_17 = arith.constant 0 : index
      %13 = vector.load %arg3[%c0_15, %c0_16, %c0_17] : memref<7x6x8xf32, #tpu.memory_space<vmem>>, vector<1x6x8xf32>
      %14 = vector.shape_cast %13 : vector<1x6x8xf32> to vector<6x8xf32>
      %15 = vector.extract_strided_slice %11 {offsets = [0, 0], sizes = [8, 256], strides = [1, 1]} : vector<8x1792xf32> to vector<8x256xf32>
      %cst_18 = arith.constant dense<0.000000e+00> : vector<6x256xf32>
      %16 = tpu.matmul %14, %15, %cst_18 {dimension_numbers = #tpu.dot_dimension_numbers<[1], [0], [0], [1], [0, 0, 1, 1], [], []>} : vector<6x8xf32>, vector<8x256xf32>, vector<6x256xf32> -> vector<6x256xf32>
      %17 = arith.addf %12, %16 : vector<6x256xf32>
      %c1 = arith.constant 1 : index
      %c0_19 = arith.constant 0 : index
      %c0_20 = arith.constant 0 : index
      %18 = vector.load %arg3[%c1, %c0_19, %c0_20] : memref<7x6x8xf32, #tpu.memory_space<vmem>>, vector<1x6x8xf32>
      %19 = vector.shape_cast %18 : vector<1x6x8xf32> to vector<6x8xf32>
      %20 = vector.extract_strided_slice %11 {offsets = [0, 256], sizes = [8, 256], strides = [1, 1]} : vector<8x1792xf32> to vector<8x256xf32>
      %cst_21 = arith.constant dense<0.000000e+00> : vector<6x256xf32>
      %21 = tpu.matmul %19, %20, %cst_21 {dimension_numbers = #tpu.dot_dimension_numbers<[1], [0], [0], [1], [0, 0, 1, 1], [], []>} : vector<6x8xf32>, vector<8x256xf32>, vector<6x256xf32> -> vector<6x256xf32>
      %22 = arith.addf %17, %21 : vector<6x256xf32>
      %c2 = arith.constant 2 : index
      %c0_22 = arith.constant 0 : index
      %c0_23 = arith.constant 0 : index
      %23 = vector.load %arg3[%c2, %c0_22, %c0_23] : memref<7x6x8xf32, #tpu.memory_space<vmem>>, vector<1x6x8xf32>
      %24 = vector.shape_cast %23 : vector<1x6x8xf32> to vector<6x8xf32>
      %25 = vector.extract_strided_slice %11 {offsets = [0, 512], sizes = [8, 256], strides = [1, 1]} : vector<8x1792xf32> to vector<8x256xf32>
      %cst_24 = arith.constant dense<0.000000e+00> : vector<6x256xf32>
      %26 = tpu.matmul %24, %25, %cst_24 {dimension_numbers = #tpu.dot_dimension_numbers<[1], [0], [0], [1], [0, 0, 1, 1], [], []>} : vector<6x8xf32>, vector<8x256xf32>, vector<6x256xf32> -> vector<6x256xf32>
      %27 = arith.addf %22, %26 : vector<6x256xf32>
      %c3 = arith.constant 3 : index
      %c0_25 = arith.constant 0 : index
      %c0_26 = arith.constant 0 : index
      %28 = vector.load %arg3[%c3, %c0_25, %c0_26] : memref<7x6x8xf32, #tpu.memory_space<vmem>>, vector<1x6x8xf32>
      %29 = vector.shape_cast %28 : vector<1x6x8xf32> to vector<6x8xf32>
      %30 = vector.extract_strided_slice %11 {offsets = [0, 768], sizes = [8, 256], strides = [1, 1]} : vector<8x1792xf32> to vector<8x256xf32>
      %cst_27 = arith.constant dense<0.000000e+00> : vector<6x256xf32>
      %31 = tpu.matmul %29, %30, %cst_27 {dimension_numbers = #tpu.dot_dimension_numbers<[1], [0], [0], [1], [0, 0, 1, 1], [], []>} : vector<6x8xf32>, vector<8x256xf32>, vector<6x256xf32> -> vector<6x256xf32>
      %32 = arith.addf %27, %31 : vector<6x256xf32>
      %c4 = arith.constant 4 : index
      %c0_28 = arith.constant 0 : index
      %c0_29 = arith.constant 0 : index
      %33 = vector.load %arg3[%c4, %c0_28, %c0_29] : memref<7x6x8xf32, #tpu.memory_space<vmem>>, vector<1x6x8xf32>
      %34 = vector.shape_cast %33 : vector<1x6x8xf32> to vector<6x8xf32>
      %35 = vector.extract_strided_slice %11 {offsets = [0, 1024], sizes = [8, 256], strides = [1, 1]} : vector<8x1792xf32> to vector<8x256xf32>
      %cst_30 = arith.constant dense<0.000000e+00> : vector<6x256xf32>
      %36 = tpu.matmul %34, %35, %cst_30 {dimension_numbers = #tpu.dot_dimension_numbers<[1], [0], [0], [1], [0, 0, 1, 1], [], []>} : vector<6x8xf32>, vector<8x256xf32>, vector<6x256xf32> -> vector<6x256xf32>
      %37 = arith.addf %32, %36 : vector<6x256xf32>
      %c5 = arith.constant 5 : index
      %c0_31 = arith.constant 0 : index
      %c0_32 = arith.constant 0 : index
      %38 = vector.load %arg3[%c5, %c0_31, %c0_32] : memref<7x6x8xf32, #tpu.memory_space<vmem>>, vector<1x6x8xf32>
      %39 = vector.shape_cast %38 : vector<1x6x8xf32> to vector<6x8xf32>
      %40 = vector.extract_strided_slice %11 {offsets = [0, 1280], sizes = [8, 256], strides = [1, 1]} : vector<8x1792xf32> to vector<8x256xf32>
      %cst_33 = arith.constant dense<0.000000e+00> : vector<6x256xf32>
      %41 = tpu.matmul %39, %40, %cst_33 {dimension_numbers = #tpu.dot_dimension_numbers<[1], [0], [0], [1], [0, 0, 1, 1], [], []>} : vector<6x8xf32>, vector<8x256xf32>, vector<6x256xf32> -> vector<6x256xf32>
      %42 = arith.addf %37, %41 : vector<6x256xf32>
      %c6 = arith.constant 6 : index
      %c0_34 = arith.constant 0 : index
      %c0_35 = arith.constant 0 : index
      %43 = vector.load %arg3[%c6, %c0_34, %c0_35] : memref<7x6x8xf32, #tpu.memory_space<vmem>>, vector<1x6x8xf32>
      %44 = vector.shape_cast %43 : vector<1x6x8xf32> to vector<6x8xf32>
      %45 = vector.extract_strided_slice %11 {offsets = [0, 1536], sizes = [8, 256], strides = [1, 1]} : vector<8x1792xf32> to vector<8x256xf32>
      %cst_36 = arith.constant dense<0.000000e+00> : vector<6x256xf32>
      %46 = tpu.matmul %44, %45, %cst_36 {dimension_numbers = #tpu.dot_dimension_numbers<[1], [0], [0], [1], [0, 0, 1, 1], [], []>} : vector<6x8xf32>, vector<8x256xf32>, vector<6x256xf32> -> vector<6x256xf32>
      %47 = arith.addf %42, %46 : vector<6x256xf32>
      %48 = arith.index_cast %4 : i32 to index
      %c0_37 = arith.constant 0 : index
      %c0_38 = arith.constant 0 : index
      %49 = vector.load %arg5[%48, %c0_37, %c0_38] : memref<3x6x256xf32, #tpu.memory_space<vmem>>, vector<1x6x256xf32>
      %50 = vector.shape_cast %49 : vector<1x6x256xf32> to vector<6x256xf32>
      %51 = vector.shape_cast %47 : vector<6x256xf32> to vector<1x6x256xf32>
      tpu.vector_store %arg5[%48, %c0_37, %c0_38], %51 {strides = array<i32>} : memref<3x6x256xf32, #tpu.memory_space<vmem>>, vector<1x6x256xf32>,
    }
    %c3_i32_1 = arith.constant 3 : i32
    return
  }
  func.func @transform_0(%arg0: i32) -> (i32, i32, i32) {
    %c0_i32 = arith.constant 0 : i32
    %c0_i32_0 = arith.constant 0 : i32
    %c0_i32_1 = arith.constant 0 : i32
    return %arg0, %c0_i32, %c0_i32_0 : i32, i32, i32
  }
  func.func @transform_1(%arg0: i32) -> (i32, i32) {
    %c0_i32 = arith.constant 0 : i32
    %c0_i32_0 = arith.constant 0 : i32
    %c0_i32_1 = arith.constant 0 : i32
    return %c0_i32, %c0_i32_0 : i32, i32
  }
  func.func @transform_2(%arg0: i32) -> (i32, i32, i32) {
    %c0_i32 = arith.constant 0 : i32
    %c0_i32_0 = arith.constant 0 : i32
    %c0_i32_1 = arith.constant 0 : i32
    %c0_i32_2 = arith.constant 0 : i32
    return %c0_i32, %c0_i32_0, %c0_i32_1 : i32, i32, i32
  }
  func.func @transform_3(%arg0: i32) -> (i32, i32) {
    %c0_i32 = arith.constant 0 : i32
    %c0_i32_0 = arith.constant 0 : i32
    %c0_i32_1 = arith.constant 0 : i32
    return %c0_i32, %c0_i32_0 : i32, i32
  }
  func.func @transform_4(%arg0: i32) -> (i32, i32, i32) {
    %c0_i32 = arith.constant 0 : i32
    %c0_i32_0 = arith.constant 0 : i32
    %c0_i32_1 = arith.constant 0 : i32
    return %arg0, %c0_i32, %c0_i32_0 : i32, i32, i32
  }
}

</mosaic_0001>

<bundles_post_ra>
// kernel: hexagon108_conv2d.1
= control target key start
LH: loop header
LB: loop body
LE: loop exit
PB: predicated region body
PF: predicated region fallthrough
CT: control target
= control target key end

     0   :  { %9 = vsyncpa [#allocation4], 0  ;;  %s1960_s15 = smov 0   ;;  %s2077_s0 = inlined_call_operand.vmem [shape: f32[6,4,156], index: 0, kind: input, shape index: {}]   ;;  %s2078_s1 = inlined_call_operand.hbm [shape: f32[256,1792], index: 1, kind: input, shape index: {}]   ;;  %s2079_s2 = inlined_call_operand.vmem [shape: f32[7,6,8], index: 2, kind: input, shape index: {}]   ;;  %s2080_s3 = inlined_call_operand.vmem [shape: f32[6,256], index: 3, kind: input, shape index: {}]   ;;  %s2081_s4 = inlined_call_operand.vmem [shape: f32[6,6,256], index: 4, kind: output, shape index: {}]  }
   0x1 LB: > { %s1817_s16 = sadd.s32 4294967295, %s1924_s15   ;;  %p1819_p0 = scmp.ge.s32.totalorder %s1924_s15, 1  ;;  %s1924_s15 = sphi %s1960_s15, %s15_s15  }
   0x2   : > { %p135_p1 = scmp.lt.s32.totalorder %s1924_s15, 3  ;;  %s1930_s17 = smov [#allocation3]  }
   0x3   : > { %s147_s18 = sshll.u32 %s1930_s17, 4  ;;  %p1972_p3 = scmp.eq.s32.totalorder %s1817_s16, 0  ;;  %s148_s18 = int_to_ptr.vmem [resolvable:$true] %s147_s18 }
   0x4   : > { %p1968_p2 = pnand %p1819_p0, %p135_p1  ;;  %s1895_s21 = scalar_lea.vmem %s148_s18, 57344 }
   0x5   : > { %p1896_p7 = scmp.ne.s32.totalorder %s148_s18, %s1895_s21  ;;  %p1903_p10 = scmp.lt.s32.totalorder %s148_s18, %s148_s18 }
   0x6   : > { %p1854_p4 = pneg %p1968_p2  ;;  %p1904_p11 = scmp.lt.s32.totalorder %s1895_s21, %s1895_s21 }
   0x8   : > { %p1855_p5 = pnand %p1972_p3, %p1854_p4  ;;  %p1905_p12 = por %p1904_p11, %p1903_p10 }
   0xa   : > { %p1886_p6 = pneg %p1855_p5 }
   0xc   : > { %p1898_p8 = pnand %p1896_p7, %p1886_p6 }
   0xe   : > { %p1899_p9 = pneg %p1898_p8 }
  0x10   : > { %p1906_p13 = pnand %p1905_p12, %p1899_p9 }
  0x12   : > { %1909 = shalt.err (!%p1906_p13)
}
  0x13   : > { %s1931_s22 = smov 1792   ;;  %s1932_s23 = smov 112  }
  0x14   : > { %1857 = dma.hbm_to_vmem [thread:$0]  (!%p1855_p5), %s2078_s1, 57344, %s148_s18, [#allocation4], %s1931_s22, %s1931_s22, %s1932_s23  }
  0x15   : > { %179 = sbr.rel (%p1968_p2) target bundleno = 686 (0x2ae), region = 36 }
  0x1a   : > { %1919 = dma.done.wait (%p1972_p3), [#allocation4], 57344  }
  0x1b   : > { %1921 = vsyncadd (%p1972_p3), [#allocation4], 4294909952  ;;  %s207_s26 = smul.u32 3, %s1817_s16  ;;  %v1933_v0 = vmov 0.0   ;;  %s1999_s9 = smov 0  }
  0x1c   : > { %221 = vst [vmem:[#allocation2] sm:$0xff] %v1933_v0  ;;  %222 = vst [vmem:[#allocation2 + $0x8] sm:$0xff] %v1933_v0 }
  0x1d   : > { %p208_p0 = scmp.lt.s32.totalorder %s207_s26, 5 }
  0x1f   : > { %s2085_s26 = smov (!%p208_p0, %s207_s26), 5 }
  0x20   : > { %s1846_s27 = sshll.u32 %s2085_s26, 3  ;;  %s1847_s28 = sshll.u32 %s2085_s26, 4 }
  0x21   : > { %s1992_s5 = scalar_lea.vmem %s2077_s0, %s1846_s27  ;;  %s1997_s8 = scalar_lea.vmem %s2081_s4, %s1847_s28 }
  0x22 LB: >> { %v452_v1 = vld [vmem:[#allocation3 + $0x698] sm:$0xff]  ;;  %v451_v2 = vld [vmem:[#allocation3 + $0x690] sm:$0xff]  ;;  %v438_v3 = vld [vmem:[#allocation3 + $0x628] sm:$0xff]  ;;  %s1848_s10 = sshll.u32 %s1928_s9, 3  ;;  %vm237_vm0 = vcmask 224256   ;;  %vm1189_vm1 = vcmask 64512   ;;  %s1928_s9 = sphi %s1999_s9, %s228_s9  }
  0x23   : >> { %689 = vmatprep.subr.mxu0 %v452_v1  ;;  %v437_v4 = vld [vmem:[#allocation3 + $0x620] sm:$0xff]  ;;  %v424_v5 = vld [vmem:[#allocation3 + $0x5b8] sm:$0xff]  ;;  %v423_v6 = vld [vmem:[#allocation3 + $0x5b0] sm:$0xff]  ;;  %s231_s11 = scalar_lea.vmem %s1992_s5, %s1848_s10  ;;  %s1849_s6 = sshll.u32 %s1928_s9, 4 }
  0x24   : >> { %690 = vmatpush1.msra.mxu0 %v451_v2  ;;  %v410_v7 = vld [vmem:[#allocation3 + $0x548] sm:$0xff]  ;;  %v409_v8 = vld [vmem:[#allocation3 + $0x540] sm:$0xff]  ;;  %v396_v9 = vld [vmem:[#allocation3 + $0x4d8] sm:$0xff]  ;;  %s1735_s7 = scalar_lea.vmem %s1997_s8, %s1849_s6  ;;  %s228_s9 = sadd.s32 1, %s1928_s9  }
  0x25   : >> { %691 = vmatprep.subr.mxu0 %v438_v3  ;;  %v395_v10 = vld [vmem:[#allocation3 + $0x4d0] sm:$0xff]  ;;  %v382_v11 = vld [vmem:[#allocation3 + $0x468] sm:$0xff]  ;;  %v381_v12 = vld [vmem:[#allocation3 + $0x460] sm:$0xff]  ;;  %p225_p1 = scmp.ge.s32.totalorder %s228_s9, 3  }
  0x26   : >> { %692 = vmatpush1.msra.mxu0 %v437_v4  ;;  %v368_v13 = vld [vmem:[#allocation3 + $0x3f8] sm:$0xff]  ;;  %v367_v14 = vld [vmem:[#allocation3 + $0x3f0] sm:$0xff]  ;;  %v354_v15 = vld [vmem:[#allocation3 + $0x388] sm:$0xff] }
  0x27   : >> { %693 = vmatprep.subr.mxu0 %v424_v5  ;;  %v353_v16 = vld [vmem:[#allocation3 + $0x380] sm:$0xff]  ;;  %v340_v17 = vld [vmem:[#allocation3 + $0x318] sm:$0xff]  ;;  %v339_v18 = vld [vmem:[#allocation3 + $0x310] sm:$0xff] }
  0x28   : >> { %694 = vmatpush1.msra.mxu0 %v423_v6  ;;  %v326_v19 = vld [vmem:[#allocation3 + $0x2a8] sm:$0xff]  ;;  %v325_v20 = vld [vmem:[#allocation3 + $0x2a0] sm:$0xff]  ;;  %v312_v22 = vld [vmem:[#allocation3 + $0x238] sm:$0xff] }
  0x29   : >> { %695 = vmatprep.subr.mxu0 %v410_v7  ;;  %v454_v21 = vld [vmem:[#allocation3 + $0x6a8] sm:$0xff]  ;;  %v453_v23 = vld [vmem:[#allocation3 + $0x6a0] sm:$0xff]  ;;  %v440_v24 = vld [vmem:[#allocation3 + $0x638] sm:$0xff] }
  0x2a   : >> { %696 = vmatpush1.msra.mxu0 %v409_v8  ;;  %760 = vmatprep.subr.mxu1 %v454_v21  ;;  %v311_v25 = vld [vmem:[#allocation3 + $0x230] sm:$0xff]  ;;  %v298_v27 = vld [vmem:[#allocation3 + $0x1c8] sm:$0xff]  ;;  %v425_v29 = vld [vmem:[#allocation3 + $0x5c0] sm:$0xff] }
  0x2b   : >> { %697 = vmatprep.subr.mxu0 %v396_v9  ;;  %761 = vmatpush1.msra.mxu1 %v453_v23  ;;  %v439_v26 = vld [vmem:[#allocation3 + $0x630] sm:$0xff]  ;;  %v426_v28 = vld [vmem:[#allocation3 + $0x5c8] sm:$0xff]  ;;  %v297_v30 = vld [vmem:[#allocation3 + $0x1c0] sm:$0xff] }
  0x2c   : >> { %698 = vmatpush1.msra.mxu0 %v395_v10  ;;  %762 = vmatprep.subr.mxu1 %v440_v24  ;;  %v412_v31 = vld [vmem:[#allocation3 + $0x558] sm:$0xff]  ;;  %v411_v33 = vld [vmem:[#allocation3 + $0x550] sm:$0xff]  ;;  %v398_v35 = vld [vmem:[#allocation3 + $0x4e8] sm:$0xff] }
  0x2d   : >> { %699 = vmatprep.subr.mxu0 %v382_v11  ;;  %763 = vmatpush1.msra.mxu1 %v439_v26  ;;  %v284_v32 = vld [vmem:[#allocation3 + $0x158] sm:$0xff]  ;;  %v283_v34 = vld [vmem:[#allocation3 + $0x150] sm:$0xff]  ;;  %v270_v36 = vld [vmem:[#allocation3 + $0xe8] sm:$0xff] }
  0x2e   : >> { %700 = vmatpush1.msra.mxu0 %v381_v12  ;;  %764 = vmatprep.subr.mxu1 %v426_v28  ;;  %v397_v37 = vld [vmem:[#allocation3 + $0x4e0] sm:$0xff]  ;;  %v384_v39 = vld [vmem:[#allocation3 + $0x478] sm:$0xff]  ;;  %v232_v40 = vld [vmem:[%s231_s11] sm:$0xff] }
  0x2f   : >> { %701 = vmatprep.subr.mxu0 %v368_v13  ;;  %765 = vmatpush1.msra.mxu1 %v425_v29  ;;  %v269_v38 = vld [vmem:[#allocation3 + $0xe0] sm:$0xff]  ;;  %v256_v41 = vld [vmem:[#allocation3 + $0x78] sm:$0xff]  ;;  %v383_v42 = vld [vmem:[#allocation3 + $0x470] sm:$0xff]  ;;  %v234_v43 = vcombine.high %v232_v40, %v232_v40  ;;  %236 = vst [vmem:[#allocation2] sm:$0xf] %v232_v40 }
  0x30   : >> { %702 = vmatpush1.msra.mxu0 %v367_v14  ;;  %766 = vmatprep.subr.mxu1 %v412_v31  ;;  %v255_v44 = vld [vmem:[#allocation3 + $0x70] sm:$0xff]  ;;  %v370_v45 = vld [vmem:[#allocation3 + $0x408] sm:$0xff]  ;;  %v369_v47 = vld [vmem:[#allocation3 + $0x400] sm:$0xff] }
  0x31   : >> { %703 = vmatprep.subr.mxu0 %v354_v15  ;;  %767 = vmatpush1.msra.mxu1 %v411_v33  ;;  %v242_v46 = vld [vmem:[#allocation3 + $0x8] sm:$0xff]  ;;  %238 = vst.msk [vmem:[#allocation2 + $0x8] sm:$0xf] %vm237_vm0, %v234_v43  ;;  %v241_v48 = vld [vmem:[#allocation3] sm:$0xff]  ;;  %v356_v49 = vld [vmem:[#allocation3 + $0x398] sm:$0xff] }
  0x32   : >> { %704 = vmatpush1.msra.mxu0 %v353_v16  ;;  %768 = vmatprep.subr.mxu1 %v398_v35  ;;  %v676_v50 = vld [vmem:[#allocation3 + $0xd98] sm:$0xff]  ;;  %v355_v51 = vld [vmem:[#allocation3 + $0x390] sm:$0xff]  ;;  %v342_v53 = vld [vmem:[#allocation3 + $0x328] sm:$0xff] }
  0x33   : >> { %705 = vmatprep.subr.mxu0 %v340_v17  ;;  %769 = vmatpush1.msra.mxu1 %v397_v37  ;;  %v675_v52 = vld [vmem:[#allocation3 + $0xd90] sm:$0xff]  ;;  %v662_v54 = vld [vmem:[#allocation3 + $0xd28] sm:$0xff]  ;;  %v341_v55 = vld [vmem:[#allocation3 + $0x320] sm:$0xff] }
  0x34   : >> { %706 = vmatpush1.msra.mxu0 %v339_v18  ;;  %770 = vmatprep.subr.mxu1 %v384_v39  ;;  %v661_v56 = vld [vmem:[#allocation3 + $0xd20] sm:$0xff]  ;;  %v648_v57 = vld [vmem:[#allocation3 + $0xcb8] sm:$0xff]  ;;  %v647_v59 = vld [vmem:[#allocation3 + $0xcb0] sm:$0xff] }
  0x35   : >> { %707 = vmatprep.subr.mxu0 %v326_v19  ;;  %771 = vmatpush1.msra.mxu1 %v383_v42  ;;  %v328_v58 = vld [vmem:[#allocation3 + $0x2b8] sm:$0xff]  ;;  %v327_v61 = vld [vmem:[#allocation3 + $0x2b0] sm:$0xff]  ;;  %v634_v62 = vld [vmem:[#allocation3 + $0xc48] sm:$0xff] }
  0x36   : >> { %708 = vmatpush1.msra.mxu0 %v325_v20  ;;  %772 = vmatprep.subr.mxu1 %v370_v45  ;;  %v314_v63 = vld [vmem:[#allocation3 + $0x248] sm:$0xff]  ;;  %v633_v0 = vld [vmem:[#allocation3 + $0xc40] sm:$0xff]  ;;  %v620_v2 = vld [vmem:[#allocation3 + $0xbd8] sm:$0xff] }
  0x37   : >> { %709 = vmatprep.subr.mxu0 %v312_v22  ;;  %773 = vmatpush1.msra.mxu1 %v369_v47  ;;  %v313_v1 = vld [vmem:[#allocation3 + $0x240] sm:$0xff]  ;;  %v300_v3 = vld [vmem:[#allocation3 + $0x1d8] sm:$0xff]  ;;  %v619_v4 = vld [vmem:[#allocation3 + $0xbd0] sm:$0xff] }
  0x38   : >> { %710 = vmatpush1.msra.mxu0 %v311_v25  ;;  %774 = vmatprep.subr.mxu1 %v356_v49  ;;  %v2006_v60 = vld [vmem:[#allocation2 + $0x8] sm:$0xff]  ;;  %v299_v5 = vld [vmem:[#allocation3 + $0x1d0] sm:$0xff]  ;;  %v606_v6 = vld [vmem:[#allocation3 + $0xb68] sm:$0xff] }
  0x39   : >> { %711 = vmatprep.subr.mxu0 %v298_v27  ;;  %775 = vmatpush1.msra.mxu1 %v355_v51  ;;  %v286_v7 = vld [vmem:[#allocation3 + $0x168] sm:$0xff]  ;;  %v605_v8 = vld [vmem:[#allocation3 + $0xb60] sm:$0xff]  ;;  %v592_v10 = vld [vmem:[#allocation3 + $0xaf8] sm:$0xff] }
  0x3a   : >> { %712 = vmatpush1.msra.mxu0 %v297_v30  ;;  %776 = vmatprep.subr.mxu1 %v342_v53  ;;  %v285_v9 = vld [vmem:[#allocation3 + $0x160] sm:$0xff]  ;;  %v272_v11 = vld [vmem:[#allocation3 + $0xf8] sm:$0xff]  ;;  %v591_v12 = vld [vmem:[#allocation3 + $0xaf0] sm:$0xff] }
  0x3b   : >> { %713 = vmatprep.subr.mxu0 %v284_v32  ;;  %777 = vmatpush1.msra.mxu1 %v341_v55  ;;  %v271_v13 = vld [vmem:[#allocation3 + $0xf0] sm:$0xff]  ;;  %v578_v14 = vld [vmem:[#allocation3 + $0xa88] sm:$0xff]  ;;  %v577_v16 = vld [vmem:[#allocation3 + $0xa80] sm:$0xff] }
  0x3c   : >> { %714 = vmatpush1.msra.mxu0 %v283_v34  ;;  %753 = vmatprep.mubr.f32.mxu0 %v2006_v60  ;;  %v258_v15 = vld [vmem:[#allocation3 + $0x88] sm:$0xff]  ;;  %v257_v17 = vld [vmem:[#allocation3 + $0x80] sm:$0xff]  ;;  %v564_v18 = vld [vmem:[#allocation3 + $0xa18] sm:$0xff] }
  0x3d   : >> { %715 = vmatprep.subr.mxu0 %v270_v36  ;;  %778 = vmatprep.subr.mxu1 %v328_v58  ;;  %v244_v19 = vld [vmem:[#allocation3 + $0x18] sm:$0xff]  ;;  %v563_v20 = vld [vmem:[#allocation3 + $0xa10] sm:$0xff]  ;;  %v550_v22 = vld [vmem:[#allocation3 + $0x9a8] sm:$0xff] }
  0x3e   : >> { %716 = vmatpush1.msra.mxu0 %v269_v38  ;;  %779 = vmatpush1.msra.mxu1 %v327_v61  ;;  %v243_v21 = vld [vmem:[#allocation3 + $0x10] sm:$0xff]  ;;  %v678_v23 = vld [vmem:[#allocation3 + $0xda8] sm:$0xff]  ;;  %v549_v24 = vld [vmem:[#allocation3 + $0x9a0] sm:$0xff] }
  0x3f   : >> { %717 = vmatprep.subr.mxu0 %v256_v41  ;;  %780 = vmatprep.subr.mxu1 %v314_v63  ;;  %v677_v25 = vld [vmem:[#allocation3 + $0xda0] sm:$0xff]  ;;  %v536_v26 = vld [vmem:[#allocation3 + $0x938] sm:$0xff]  ;;  %v535_v28 = vld [vmem:[#allocation3 + $0x930] sm:$0xff] }
  0x40   : >> { %718 = vmatpush1.msra.mxu0 %v255_v44  ;;  %781 = vmatpush1.msra.mxu1 %v313_v1  ;;  %v664_v27 = vld [vmem:[#allocation3 + $0xd38] sm:$0xff]  ;;  %v663_v29 = vld [vmem:[#allocation3 + $0xd30] sm:$0xff]  ;;  %v522_v30 = vld [vmem:[#allocation3 + $0x8c8] sm:$0xff] }
  0x41   : >> { %719 = vmatprep.subr.mxu0 %v242_v46  ;;  %782 = vmatprep.subr.mxu1 %v300_v3  ;;  %v650_v31 = vld [vmem:[#allocation3 + $0xcc8] sm:$0xff]  ;;  %v521_v32 = vld [vmem:[#allocation3 + $0x8c0] sm:$0xff]  ;;  %v508_v34 = vld [vmem:[#allocation3 + $0x858] sm:$0xff] }
  0x42   : >> { %720 = vmatpush1.msra.mxu0 %v241_v48  ;;  %783 = vmatpush1.msra.mxu1 %v299_v5  ;;  %v649_v33 = vld [vmem:[#allocation3 + $0xcc0] sm:$0xff]  ;;  %v636_v35 = vld [vmem:[#allocation3 + $0xc58] sm:$0xff]  ;;  %v507_v36 = vld [vmem:[#allocation3 + $0x850] sm:$0xff] }
  0x43   : >> { %721 = vmatprep.subr.mxu0 %v676_v50  ;;  %784 = vmatprep.subr.mxu1 %v286_v7  ;;  %v635_v37 = vld [vmem:[#allocation3 + $0xc50] sm:$0xff]  ;;  %v494_v38 = vld [vmem:[#allocation3 + $0x7e8] sm:$0xff]  ;;  %v493_v40 = vld [vmem:[#allocation3 + $0x7e0] sm:$0xff] }
  0x44   : >> { %722 = vmatpush2.msra.mxu0 %v675_v52  ;;  %785 = vmatpush1.msra.mxu1 %v285_v9  ;;  %v622_v39 = vld [vmem:[#allocation3 + $0xbe8] sm:$0xff]  ;;  %v621_v41 = vld [vmem:[#allocation3 + $0xbe0] sm:$0xff]  ;;  %v480_v42 = vld [vmem:[#allocation3 + $0x778] sm:$0xff] }
  0x45   : >> { %723 = vmatprep.subr.mxu0 %v662_v54  ;;  %786 = vmatprep.subr.mxu1 %v272_v11  ;;  %v608_v43 = vld [vmem:[#allocation3 + $0xb78] sm:$0xff]  ;;  %v479_v44 = vld [vmem:[#allocation3 + $0x770] sm:$0xff]  ;;  %v466_v46 = vld [vmem:[#allocation3 + $0x708] sm:$0xff] }
  0x46   : >> { %724 = vmatpush2.msra.mxu0 %v661_v56  ;;  %787 = vmatpush1.msra.mxu1 %v271_v13  ;;  %v607_v45 = vld [vmem:[#allocation3 + $0xb70] sm:$0xff]  ;;  %v594_v47 = vld [vmem:[#allocation3 + $0xb08] sm:$0xff]  ;;  %v465_v48 = vld [vmem:[#allocation3 + $0x700] sm:$0xff] }
  0x47   : >> { %725 = vmatprep.subr.mxu0 %v648_v57  ;;  %788 = vmatprep.subr.mxu1 %v258_v15  ;;  %v593_v49 = vld [vmem:[#allocation3 + $0xb00] sm:$0xff]  ;;  %v2009_v50 = vld [vmem:[#allocation2] sm:$0xff]  ;;  %v456_v51 = vld [vmem:[#allocation3 + $0x6b8] sm:$0xff] }
  0x48   : >> { %726 = vmatpush2.msra.mxu0 %v647_v59  ;;  %789 = vmatpush1.msra.mxu1 %v257_v17  ;;  %v455_v52 = vld [vmem:[#allocation3 + $0x6b0] sm:$0xff]  ;;  %v580_v53 = vld [vmem:[#allocation3 + $0xa98] sm:$0xff]  ;;  %v442_v54 = vld [vmem:[#allocation3 + $0x648] sm:$0xff] }
  0x49   : >> { %727 = vmatprep.subr.mxu0 %v634_v62  ;;  %790 = vmatprep.subr.mxu1 %v244_v19  ;;  %v579_v55 = vld [vmem:[#allocation3 + $0xa90] sm:$0xff]  ;;  %v441_v56 = vld [vmem:[#allocation3 + $0x640] sm:$0xff]  ;;  %v566_v57 = vld [vmem:[#allocation3 + $0xa28] sm:$0xff] }
  0x4a   : >> { %728 = vmatpush2.msra.mxu0 %v633_v0  ;;  %791 = vmatpush1.msra.mxu1 %v243_v21  ;;  %v428_v58 = vld [vmem:[#allocation3 + $0x5d8] sm:$0xff]  ;;  %v565_v59 = vld [vmem:[#allocation3 + $0xa20] sm:$0xff]  ;;  %v427_v61 = vld [vmem:[#allocation3 + $0x5d0] sm:$0xff] }
  0x4b   : >> { %729 = vmatprep.subr.mxu0 %v620_v2  ;;  %792 = vmatprep.subr.mxu1 %v678_v23  ;;  %v552_v62 = vld [vmem:[#allocation3 + $0x9b8] sm:$0xff]  ;;  %v414_v63 = vld [vmem:[#allocation3 + $0x568] sm:$0xff]  ;;  %v551_v0 = vld [vmem:[#allocation3 + $0x9b0] sm:$0xff] }
  0x4c   : >> { %730 = vmatpush2.msra.mxu0 %v619_v4  ;;  %793 = vmatpush2.msra.mxu1 %v677_v25  ;;  %v413_v1 = vld [vmem:[#allocation3 + $0x560] sm:$0xff]  ;;  %v538_v2 = vld [vmem:[#allocation3 + $0x948] sm:$0xff]  ;;  %v400_v3 = vld [vmem:[#allocation3 + $0x4f8] sm:$0xff] }
  0x4d   : >> { %731 = vmatprep.subr.mxu0 %v606_v6  ;;  %794 = vmatprep.subr.mxu1 %v664_v27  ;;  %v537_v4 = vld [vmem:[#allocation3 + $0x940] sm:$0xff]  ;;  %v399_v5 = vld [vmem:[#allocation3 + $0x4f0] sm:$0xff]  ;;  %v524_v6 = vld [vmem:[#allocation3 + $0x8d8] sm:$0xff] }
  0x4e   : >> { %732 = vmatpush2.msra.mxu0 %v605_v8  ;;  %795 = vmatpush2.msra.mxu1 %v663_v29  ;;  %v386_v7 = vld [vmem:[#allocation3 + $0x488] sm:$0xff]  ;;  %v523_v8 = vld [vmem:[#allocation3 + $0x8d0] sm:$0xff]  ;;  %v385_v9 = vld [vmem:[#allocation3 + $0x480] sm:$0xff] }
  0x4f   : >> { %733 = vmatprep.subr.mxu0 %v592_v10  ;;  %796 = vmatprep.subr.mxu1 %v650_v31  ;;  %v510_v10 = vld [vmem:[#allocation3 + $0x868] sm:$0xff]  ;;  %v372_v11 = vld [vmem:[#allocation3 + $0x418] sm:$0xff]  ;;  %v371_v13 = vld [vmem:[#allocation3 + $0x410] sm:$0xff] }
  0x50   : >> { %734 = vmatpush2.msra.mxu0 %v591_v12  ;;  %797 = vmatpush2.msra.mxu1 %v649_v33  ;;  %v509_v12 = vld [vmem:[#allocation3 + $0x860] sm:$0xff]  ;;  %v358_v15 = vld [vmem:[#allocation3 + $0x3a8] sm:$0xff]  ;;  %v344_v19 = vld [vmem:[#allocation3 + $0x338] sm:$0xff] }
  0x51   : >> { %735 = vmatprep.subr.mxu0 %v578_v14  ;;  %798 = vmatprep.subr.mxu1 %v636_v35  ;;  %v496_v14 = vld [vmem:[#allocation3 + $0x7f8] sm:$0xff]  ;;  %v357_v17 = vld [vmem:[#allocation3 + $0x3a0] sm:$0xff]  ;;  %v343_v21 = vld [vmem:[#allocation3 + $0x330] sm:$0xff] }
  0x52   : >> { %736 = vmatpush2.msra.mxu0 %v577_v16  ;;  %799 = vmatpush2.msra.mxu1 %v635_v37  ;;  %v495_v16 = vld [vmem:[#allocation3 + $0x7f0] sm:$0xff]  ;;  %v330_v23 = vld [vmem:[#allocation3 + $0x2c8] sm:$0xff]  ;;  %v329_v25 = vld [vmem:[#allocation3 + $0x2c0] sm:$0xff] }
  0x53   : >> { %737 = vmatprep.subr.mxu0 %v564_v18  ;;  %800 = vmatprep.subr.mxu1 %v622_v39  ;;  %v482_v18 = vld [vmem:[#allocation3 + $0x788] sm:$0xff]  ;;  %v301_v31 = vld [vmem:[#allocation3 + $0x1e0] sm:$0xff]  ;;  %v288_v33 = vld [vmem:[#allocation3 + $0x178] sm:$0xff] }
  0x54   : >> { %738 = vmatpush2.msra.mxu0 %v563_v20  ;;  %801 = vmatpush2.msra.mxu1 %v621_v41  ;;  %v481_v20 = vld [vmem:[#allocation3 + $0x780] sm:$0xff]  ;;  %v458_v27 = vld [vmem:[#allocation3 + $0x6c8] sm:$0xff]  ;;  %v287_v35 = vld [vmem:[#allocation3 + $0x170] sm:$0xff] }
  0x55   : >> { %739 = vmatprep.subr.mxu0 %v550_v22  ;;  %802 = vmatprep.subr.mxu1 %v608_v43  ;;  %v468_v22 = vld [vmem:[#allocation3 + $0x718] sm:$0xff]  ;;  %v302_v29 = vld [vmem:[#allocation3 + $0x1e8] sm:$0xff]  ;;  %v273_v39 = vld [vmem:[#allocation3 + $0x100] sm:$0xff] }
  0x56   : >> { %740 = vmatpush2.msra.mxu0 %v549_v24  ;;  %803 = vmatpush2.msra.mxu1 %v607_v45  ;;  %v467_v24 = vld [vmem:[#allocation3 + $0x710] sm:$0xff]  ;;  %v274_v37 = vld [vmem:[#allocation3 + $0x108] sm:$0xff]  ;;  %v260_v41 = vld [vmem:[#allocation3 + $0x98] sm:$0xff] }
  0x57   : >> { %741 = vmatprep.subr.mxu0 %v536_v26  ;;  %804 = vmatprep.subr.mxu1 %v594_v47  ;;  %v316_v26 = vld [vmem:[#allocation3 + $0x258] sm:$0xff]  ;;  %v259_v43 = vld [vmem:[#allocation3 + $0x90] sm:$0xff]  ;;  %v246_v45 = vld [vmem:[#allocation3 + $0x28] sm:$0xff] }
  0x58   : >> { %742 = vmatpush2.msra.mxu0 %v535_v28  ;;  %805 = vmatpush2.msra.mxu1 %v593_v49  ;;  %v315_v28 = vld [vmem:[#allocation3 + $0x250] sm:$0xff]  ;;  %v245_v47 = vld [vmem:[#allocation3 + $0x20] sm:$0xff]  ;;  %v680_v49 = vld [vmem:[#allocation3 + $0xdb8] sm:$0xff] }
  0x59   : >> { %743 = vmatprep.subr.mxu0 %v522_v30  ;;  %806 = vmatprep.subr.mxu1 %v580_v53  ;;  %v457_v30 = vld [vmem:[#allocation3 + $0x6c0] sm:$0xff]  ;;  %v666_v53 = vld [vmem:[#allocation3 + $0xd48] sm:$0xff] }
  0x5a   : >> { %744 = vmatpush2.msra.mxu0 %v521_v32  ;;  %807 = vmatpush2.msra.mxu1 %v579_v55  ;;  %v444_v32 = vld [vmem:[#allocation3 + $0x658] sm:$0xff]  ;;  %v665_v55 = vld [vmem:[#allocation3 + $0xd40] sm:$0xff] }
  0x5b   : >> { %745 = vmatprep.subr.mxu0 %v508_v34  ;;  %808 = vmatprep.subr.mxu1 %v566_v57  ;;  %v443_v34 = vld [vmem:[#allocation3 + $0x650] sm:$0xff]  ;;  %v652_v57 = vld [vmem:[#allocation3 + $0xcd8] sm:$0xff] }
  0x5c   : >> { %746 = vmatpush2.msra.mxu0 %v507_v36  ;;  %809 = vmatpush2.msra.mxu1 %v565_v59  ;;  %v430_v36 = vld [vmem:[#allocation3 + $0x5e8] sm:$0xff]  ;;  %v651_v59 = vld [vmem:[#allocation3 + $0xcd0] sm:$0xff] }
  0x5d   : >> { %747 = vmatprep.subr.mxu0 %v494_v38  ;;  %810 = vmatprep.subr.mxu1 %v552_v62  ;;  %v429_v38 = vld [vmem:[#allocation3 + $0x5e0] sm:$0xff]  ;;  %v638_v62 = vld [vmem:[#allocation3 + $0xc68] sm:$0xff] }
  0x5e   : >> { %748 = vmatpush2.msra.mxu0 %v493_v40  ;;  %811 = vmatpush2.msra.mxu1 %v551_v0  ;;  %v416_v40 = vld [vmem:[#allocation3 + $0x578] sm:$0xff]  ;;  %v637_v0 = vld [vmem:[#allocation3 + $0xc60] sm:$0xff] }
  0x5f   : >> { %749 = vmatprep.subr.mxu0 %v480_v42  ;;  %812 = vmatprep.subr.mxu1 %v538_v2  ;;  %v415_v42 = vld [vmem:[#allocation3 + $0x570] sm:$0xff]  ;;  %v624_v2 = vld [vmem:[#allocation3 + $0xbf8] sm:$0xff] }
  0x60   : >> { %750 = vmatpush2.msra.mxu0 %v479_v44  ;;  %813 = vmatpush2.msra.mxu1 %v537_v4  ;;  %v402_v44 = vld [vmem:[#allocation3 + $0x508] sm:$0xff]  ;;  %v623_v4 = vld [vmem:[#allocation3 + $0xbf0] sm:$0xff] }
  0x61   : >> { %751 = vmatprep.subr.mxu0 %v466_v46  ;;  %814 = vmatprep.subr.mxu1 %v524_v6  ;;  %v401_v46 = vld [vmem:[#allocation3 + $0x500] sm:$0xff]  ;;  %v610_v6 = vld [vmem:[#allocation3 + $0xb88] sm:$0xff] }
  0x62   : >> { %752 = vmatpush2.msra.mxu0 %v465_v48  ;;  %815 = vmatpush2.msra.mxu1 %v523_v8  ;;  %v388_v48 = vld [vmem:[#allocation3 + $0x498] sm:$0xff]  ;;  %v609_v8 = vld [vmem:[#allocation3 + $0xb80] sm:$0xff] }
  0x63   : >> { %754 = vmatmul.mubr.f32.vlgmr.msra.gmra.mxu0 %v2009_v50  ;;  %831 = vmatprep.subr.mxu0 %v456_v51  ;;  %v387_v51 = vld [vmem:[#allocation3 + $0x490] sm:$0xff] }
  0x64   : >> { %832 = vmatpush1.msra.mxu0 %v455_v52  ;;  %816 = vmatprep.subr.mxu1 %v510_v10  ;;  %v679_v52 = vld [vmem:[#allocation3 + $0xdb0] sm:$0xff]  ;;  %v596_v10 = vld [vmem:[#allocation3 + $0xb18] sm:$0xff] }
  0x65   : >> { %833 = vmatprep.subr.mxu0 %v442_v54  ;;  %817 = vmatpush2.msra.mxu1 %v509_v12  ;;  %v374_v54 = vld [vmem:[#allocation3 + $0x428] sm:$0xff]  ;;  %v595_v12 = vld [vmem:[#allocation3 + $0xb10] sm:$0xff] }
  0x66   : >> { %834 = vmatpush1.msra.mxu0 %v441_v56  ;;  %818 = vmatprep.subr.mxu1 %v496_v14  ;;  %v373_v56 = vld [vmem:[#allocation3 + $0x420] sm:$0xff]  ;;  %v582_v14 = vld [vmem:[#allocation3 + $0xaa8] sm:$0xff] }
  0x67   : >> { %835 = vmatprep.subr.mxu0 %v428_v58  ;;  %819 = vmatpush2.msra.mxu1 %v495_v16  ;;  %v360_v58 = vld [vmem:[#allocation3 + $0x3b8] sm:$0xff]  ;;  %v581_v16 = vld [vmem:[#allocation3 + $0xaa0] sm:$0xff] }
  0x68   : >> { %836 = vmatpush1.msra.mxu0 %v427_v61  ;;  %820 = vmatprep.subr.mxu1 %v482_v18  ;;  %v359_v61 = vld [vmem:[#allocation3 + $0x3b0] sm:$0xff]  ;;  %v568_v18 = vld [vmem:[#allocation3 + $0xa38] sm:$0xff] }
  0x69   : >> { %837 = vmatprep.subr.mxu0 %v414_v63  ;;  %821 = vmatpush2.msra.mxu1 %v481_v20  ;;  %v346_v63 = vld [vmem:[#allocation3 + $0x348] sm:$0xff]  ;;  %v567_v20 = vld [vmem:[#allocation3 + $0xa30] sm:$0xff] }
  0x6a   : >> { %838 = vmatpush1.msra.mxu0 %v413_v1  ;;  %822 = vmatprep.subr.mxu1 %v468_v22  ;;  %v345_v1 = vld [vmem:[#allocation3 + $0x340] sm:$0xff]  ;;  %v554_v22 = vld [vmem:[#allocation3 + $0x9c8] sm:$0xff] }
  0x6b   : >> { %839 = vmatprep.subr.mxu0 %v400_v3  ;;  %823 = vmatpush2.msra.mxu1 %v467_v24  ;;  %v332_v3 = vld [vmem:[#allocation3 + $0x2d8] sm:$0xff]  ;;  %v553_v24 = vld [vmem:[#allocation3 + $0x9c0] sm:$0xff] }
  0x6c   : >> { %840 = vmatpush1.msra.mxu0 %v399_v5  ;;  %824 = vmatprep.mubr.f32.mxu1 %v2006_v60  ;;  %v331_v5 = vld [vmem:[#allocation3 + $0x2d0] sm:$0xff] }
  0x6d   : >> { %841 = vmatprep.subr.mxu0 %v386_v7  ;;  %902 = vmatprep.subr.mxu1 %v458_v27  ;;  %v318_v7 = vld [vmem:[#allocation3 + $0x268] sm:$0xff]  ;;  %v248_v27 = vld [vmem:[#allocation3 + $0x38] sm:$0xff] }
  0x6e   : >> { %842 = vmatpush1.msra.mxu0 %v385_v9  ;;  %825 = vmatmul.mubr.f32.vlgmr.msra.gmra.mxu1 %v2009_v50  ;;  %v317_v9 = vld [vmem:[#allocation3 + $0x260] sm:$0xff] }
  0x6f   : >> { %843 = vmatprep.subr.mxu0 %v372_v11  ;;  %903 = vmatpush1.msra.mxu1 %v457_v30  ;;  %v304_v11 = vld [vmem:[#allocation3 + $0x1f8] sm:$0xff]  ;;  %v526_v30 = vld [vmem:[#allocation3 + $0x8e8] sm:$0xff] }
  0x70   : >> { %844 = vmatpush1.msra.mxu0 %v371_v13  ;;  %904 = vmatprep.subr.mxu1 %v444_v32  ;;  %v303_v13 = vld [vmem:[#allocation3 + $0x1f0] sm:$0xff]  ;;  %v525_v32 = vld [vmem:[#allocation3 + $0x8e0] sm:$0xff] }
  0x71   : >> { %845 = vmatprep.subr.mxu0 %v358_v15  ;;  %905 = vmatpush1.msra.mxu1 %v443_v34  ;;  %v290_v15 = vld [vmem:[#allocation3 + $0x188] sm:$0xff]  ;;  %v512_v34 = vld [vmem:[#allocation3 + $0x878] sm:$0xff] }
  0x72   : >> { %846 = vmatpush1.msra.mxu0 %v357_v17  ;;  %906 = vmatprep.subr.mxu1 %v430_v36  ;;  %v289_v17 = vld [vmem:[#allocation3 + $0x180] sm:$0xff]  ;;  %v511_v36 = vld [vmem:[#allocation3 + $0x870] sm:$0xff] }
  0x73   : >> { %847 = vmatprep.subr.mxu0 %v344_v19  ;;  %907 = vmatpush1.msra.mxu1 %v429_v38  ;;  %v276_v19 = vld [vmem:[#allocation3 + $0x118] sm:$0xff]  ;;  %v498_v38 = vld [vmem:[#allocation3 + $0x808] sm:$0xff] }
  0x74   : >> { %848 = vmatpush1.msra.mxu0 %v343_v21  ;;  %908 = vmatprep.subr.mxu1 %v416_v40  ;;  %v275_v21 = vld [vmem:[#allocation3 + $0x110] sm:$0xff]  ;;  %v497_v40 = vld [vmem:[#allocation3 + $0x800] sm:$0xff] }
  0x75   : >> { %849 = vmatprep.subr.mxu0 %v330_v23  ;;  %909 = vmatpush1.msra.mxu1 %v415_v42  ;;  %v262_v23 = vld [vmem:[#allocation3 + $0xa8] sm:$0xff]  ;;  %v484_v42 = vld [vmem:[#allocation3 + $0x798] sm:$0xff] }
  0x76   : >> { %850 = vmatpush1.msra.mxu0 %v329_v25  ;;  %910 = vmatprep.subr.mxu1 %v402_v44  ;;  %v261_v25 = vld [vmem:[#allocation3 + $0xa0] sm:$0xff]  ;;  %v483_v44 = vld [vmem:[#allocation3 + $0x790] sm:$0xff] }
  0x77   : >> { %851 = vmatprep.subr.mxu0 %v316_v26  ;;  %911 = vmatpush1.msra.mxu1 %v401_v46  ;;  %v540_v26 = vld [vmem:[#allocation3 + $0x958] sm:$0xff]  ;;  %v470_v46 = vld [vmem:[#allocation3 + $0x728] sm:$0xff] }
  0x78   : >> { %852 = vmatpush1.msra.mxu0 %v315_v28  ;;  %912 = vmatprep.subr.mxu1 %v388_v48  ;;  %v539_v28 = vld [vmem:[#allocation3 + $0x950] sm:$0xff]  ;;  %v469_v48 = vld [vmem:[#allocation3 + $0x720] sm:$0xff] }
  0x79   : >> { %853 = vmatprep.subr.mxu0 %v302_v29  ;;  %913 = vmatpush1.msra.mxu1 %v387_v51  ;;  %v247_v29 = vld [vmem:[#allocation3 + $0x30] sm:$0xff]  ;;  %v460_v51 = vld [vmem:[#allocation3 + $0x6d8] sm:$0xff] }
  0x7a   : >> { %854 = vmatpush1.msra.mxu0 %v301_v31  ;;  %895 = vmatprep.mubr.f32.mxu0 %v2006_v60  ;;  %v682_v31 = vld [vmem:[#allocation3 + $0xdc8] sm:$0xff] }
  0x7b   : >> { %855 = vmatprep.subr.mxu0 %v288_v33  ;;  %914 = vmatprep.subr.mxu1 %v374_v54  ;;  %v681_v33 = vld [vmem:[#allocation3 + $0xdc0] sm:$0xff]  ;;  %v446_v54 = vld [vmem:[#allocation3 + $0x668] sm:$0xff] }
  0x7c   : >> { %856 = vmatpush1.msra.mxu0 %v287_v35  ;;  %915 = vmatpush1.msra.mxu1 %v373_v56  ;;  %v668_v35 = vld [vmem:[#allocation3 + $0xd58] sm:$0xff]  ;;  %v445_v56 = vld [vmem:[#allocation3 + $0x660] sm:$0xff] }
  0x7d   : >> { %857 = vmatprep.subr.mxu0 %v274_v37  ;;  %916 = vmatprep.subr.mxu1 %v360_v58  ;;  %v667_v37 = vld [vmem:[#allocation3 + $0xd50] sm:$0xff]  ;;  %v432_v58 = vld [vmem:[#allocation3 + $0x5f8] sm:$0xff] }
  0x7e   : >> { %858 = vmatpush1.msra.mxu0 %v273_v39  ;;  %917 = vmatpush1.msra.mxu1 %v359_v61  ;;  %v654_v39 = vld [vmem:[#allocation3 + $0xce8] sm:$0xff]  ;;  %v431_v61 = vld [vmem:[#allocation3 + $0x5f0] sm:$0xff] }
  0x7f   : >> { %859 = vmatprep.subr.mxu0 %v260_v41  ;;  %918 = vmatprep.subr.mxu1 %v346_v63  ;;  %v653_v41 = vld [vmem:[#allocation3 + $0xce0] sm:$0xff]  ;;  %v418_v63 = vld [vmem:[#allocation3 + $0x588] sm:$0xff] }
  0x80   : >> { %860 = vmatpush1.msra.mxu0 %v259_v43  ;;  %919 = vmatpush1.msra.mxu1 %v345_v1  ;;  %v640_v43 = vld [vmem:[#allocation3 + $0xc78] sm:$0xff]  ;;  %v417_v1 = vld [vmem:[#allocation3 + $0x580] sm:$0xff] }
  0x81   : >> { %861 = vmatprep.subr.mxu0 %v246_v45  ;;  %920 = vmatprep.subr.mxu1 %v332_v3  ;;  %v639_v45 = vld [vmem:[#allocation3 + $0xc70] sm:$0xff]  ;;  %v404_v3 = vld [vmem:[#allocation3 + $0x518] sm:$0xff] }
  0x82   : >> { %862 = vmatpush1.msra.mxu0 %v245_v47  ;;  %921 = vmatpush1.msra.mxu1 %v331_v5  ;;  %v626_v47 = vld [vmem:[#allocation3 + $0xc08] sm:$0xff]  ;;  %v403_v5 = vld [vmem:[#allocation3 + $0x510] sm:$0xff] }
  0x83   : >> { %863 = vmatprep.subr.mxu0 %v680_v49  ;;  %922 = vmatprep.subr.mxu1 %v318_v7  ;;  %v625_v49 = vld [vmem:[#allocation3 + $0xc00] sm:$0xff]  ;;  %v390_v7 = vld [vmem:[#allocation3 + $0x4a8] sm:$0xff] }
  0x84   : >> { %864 = vmatpush2.msra.mxu0 %v679_v52  ;;  %923 = vmatpush1.msra.mxu1 %v317_v9  ;;  %v459_v52 = vld [vmem:[#allocation3 + $0x6d0] sm:$0xff]  ;;  %v389_v9 = vld [vmem:[#allocation3 + $0x4a0] sm:$0xff] }
  0x85   : >> { %865 = vmatprep.subr.mxu0 %v666_v53  ;;  %924 = vmatprep.subr.mxu1 %v304_v11  ;;  %v612_v53 = vld [vmem:[#allocation3 + $0xb98] sm:$0xff] }
  0x86   : >> { %866 = vmatpush2.msra.mxu0 %v665_v55  ;;  %925 = vmatpush1.msra.mxu1 %v303_v13  ;;  %v611_v55 = vld [vmem:[#allocation3 + $0xb90] sm:$0xff]  ;;  %v376_v11 = vld [vmem:[#allocation3 + $0x438] sm:$0xff] }
  0x87   : >> { %867 = vmatprep.subr.mxu0 %v652_v57  ;;  %926 = vmatprep.subr.mxu1 %v290_v15  ;;  %v598_v57 = vld [vmem:[#allocation3 + $0xb28] sm:$0xff]  ;;  %v375_v13 = vld [vmem:[#allocation3 + $0x430] sm:$0xff] }
  0x88   : >> { %868 = vmatpush2.msra.mxu0 %v651_v59  ;;  %927 = vmatpush1.msra.mxu1 %v289_v17  ;;  %v597_v59 = vld [vmem:[#allocation3 + $0xb20] sm:$0xff]  ;;  %v362_v15 = vld [vmem:[#allocation3 + $0x3c8] sm:$0xff] }
  0x89   : >> { %869 = vmatprep.subr.mxu0 %v638_v62  ;;  %928 = vmatprep.subr.mxu1 %v276_v19  ;;  %v584_v62 = vld [vmem:[#allocation3 + $0xab8] sm:$0xff]  ;;  %v361_v17 = vld [vmem:[#allocation3 + $0x3c0] sm:$0xff] }
  0x8a   : >> { %870 = vmatpush2.msra.mxu0 %v637_v0  ;;  %929 = vmatpush1.msra.mxu1 %v275_v21  ;;  %v583_v0 = vld [vmem:[#allocation3 + $0xab0] sm:$0xff]  ;;  %v348_v19 = vld [vmem:[#allocation3 + $0x358] sm:$0xff] }
  0x8b   : >> { %871 = vmatprep.subr.mxu0 %v624_v2  ;;  %930 = vmatprep.subr.mxu1 %v262_v23  ;;  %v570_v2 = vld [vmem:[#allocation3 + $0xa48] sm:$0xff]  ;;  %v347_v21 = vld [vmem:[#allocation3 + $0x350] sm:$0xff] }
  0x8c   : >> { %872 = vmatpush2.msra.mxu0 %v623_v4  ;;  %931 = vmatpush1.msra.mxu1 %v261_v25  ;;  %v569_v4 = vld [vmem:[#allocation3 + $0xa40] sm:$0xff]  ;;  %v334_v23 = vld [vmem:[#allocation3 + $0x2e8] sm:$0xff] }
  0x8d   : >> { %873 = vmatprep.subr.mxu0 %v610_v6  ;;  %932 = vmatprep.subr.mxu1 %v248_v27  ;;  %v556_v6 = vld [vmem:[#allocation3 + $0x9d8] sm:$0xff]  ;;  %v333_v25 = vld [vmem:[#allocation3 + $0x2e0] sm:$0xff] }
  0x8e   : >> { %874 = vmatpush2.msra.mxu0 %v609_v8  ;;  %933 = vmatpush1.msra.mxu1 %v247_v29  ;;  %v555_v8 = vld [vmem:[#allocation3 + $0x9d0] sm:$0xff]  ;;  %v320_v27 = vld [vmem:[#allocation3 + $0x278] sm:$0xff] }
  0x8f   : >> { %875 = vmatprep.subr.mxu0 %v596_v10  ;;  %934 = vmatprep.subr.mxu1 %v682_v31  ;;  %v542_v10 = vld [vmem:[#allocation3 + $0x968] sm:$0xff]  ;;  %v319_v29 = vld [vmem:[#allocation3 + $0x270] sm:$0xff] }
  0x90   : >> { %876 = vmatpush2.msra.mxu0 %v595_v12  ;;  %935 = vmatpush2.msra.mxu1 %v681_v33  ;;  %v541_v12 = vld [vmem:[#allocation3 + $0x960] sm:$0xff]  ;;  %v306_v31 = vld [vmem:[#allocation3 + $0x208] sm:$0xff] }
  0x91   : >> { %877 = vmatprep.subr.mxu0 %v582_v14  ;;  %936 = vmatprep.subr.mxu1 %v668_v35  ;;  %v528_v14 = vld [vmem:[#allocation3 + $0x8f8] sm:$0xff]  ;;  %v305_v33 = vld [vmem:[#allocation3 + $0x200] sm:$0xff]  ;;  %v462_v35 = vld [vmem:[#allocation3 + $0x6e8] sm:$0xff] }
  0x92   : >> { %878 = vmatpush2.msra.mxu0 %v581_v16  ;;  %937 = vmatpush2.msra.mxu1 %v667_v37  ;;  %v527_v16 = vld [vmem:[#allocation3 + $0x8f0] sm:$0xff]  ;;  %v278_v37 = vld [vmem:[#allocation3 + $0x128] sm:$0xff] }
  0x93   : >> { %879 = vmatprep.subr.mxu0 %v568_v18  ;;  %938 = vmatprep.subr.mxu1 %v654_v39  ;;  %v514_v18 = vld [vmem:[#allocation3 + $0x888] sm:$0xff]  ;;  %v277_v39 = vld [vmem:[#allocation3 + $0x120] sm:$0xff] }
  0x94   : >> { %880 = vmatpush2.msra.mxu0 %v567_v20  ;;  %939 = vmatpush2.msra.mxu1 %v653_v41  ;;  %v513_v20 = vld [vmem:[#allocation3 + $0x880] sm:$0xff]  ;;  %v264_v41 = vld [vmem:[#allocation3 + $0xb8] sm:$0xff] }
  0x95   : >> { %881 = vmatprep.subr.mxu0 %v554_v22  ;;  %940 = vmatprep.subr.mxu1 %v640_v43  ;;  %v500_v22 = vld [vmem:[#allocation3 + $0x818] sm:$0xff]  ;;  %v263_v43 = vld [vmem:[#allocation3 + $0xb0] sm:$0xff] }
  0x96   : >> { %882 = vmatpush2.msra.mxu0 %v553_v24  ;;  %941 = vmatpush2.msra.mxu1 %v639_v45  ;;  %v499_v24 = vld [vmem:[#allocation3 + $0x810] sm:$0xff]  ;;  %v250_v45 = vld [vmem:[#allocation3 + $0x48] sm:$0xff] }
  0x97   : >> { %883 = vmatprep.subr.mxu0 %v540_v26  ;;  %942 = vmatprep.subr.mxu1 %v626_v47  ;;  %v486_v26 = vld [vmem:[#allocation3 + $0x7a8] sm:$0xff]  ;;  %v420_v47 = vld [vmem:[#allocation3 + $0x598] sm:$0xff] }
  0x98   : >> { %884 = vmatpush2.msra.mxu0 %v539_v28  ;;  %943 = vmatpush2.msra.mxu1 %v625_v49  ;;  %v485_v28 = vld [vmem:[#allocation3 + $0x7a0] sm:$0xff]  ;;  %v419_v49 = vld [vmem:[#allocation3 + $0x590] sm:$0xff] }
  0x99   : >> { %885 = vmatprep.subr.mxu0 %v526_v30  ;;  %944 = vmatprep.subr.mxu1 %v612_v53  ;;  %v472_v30 = vld [vmem:[#allocation3 + $0x738] sm:$0xff]  ;;  %v405_v53 = vld [vmem:[#allocation3 + $0x520] sm:$0xff] }
  0x9a   : >> { %886 = vmatpush2.msra.mxu0 %v525_v32  ;;  %945 = vmatpush2.msra.mxu1 %v611_v55  ;;  %v471_v32 = vld [vmem:[#allocation3 + $0x730] sm:$0xff]  ;;  %v392_v55 = vld [vmem:[#allocation3 + $0x4b8] sm:$0xff] }
  0x9b   : >> { %887 = vmatprep.subr.mxu0 %v512_v34  ;;  %946 = vmatprep.subr.mxu1 %v598_v57  ;;  %v292_v34 = vld [vmem:[#allocation3 + $0x198] sm:$0xff]  ;;  %v391_v57 = vld [vmem:[#allocation3 + $0x4b0] sm:$0xff] }
  0x9c   : >> { %888 = vmatpush2.msra.mxu0 %v511_v36  ;;  %947 = vmatpush2.msra.mxu1 %v597_v59  ;;  %v291_v36 = vld [vmem:[#allocation3 + $0x190] sm:$0xff]  ;;  %v642_v59 = vld [vmem:[#allocation3 + $0xc88] sm:$0xff] }
  0x9d   : >> { %889 = vmatprep.subr.mxu0 %v498_v38  ;;  %948 = vmatprep.subr.mxu1 %v584_v62  ;;  %v461_v38 = vld [vmem:[#allocation3 + $0x6e0] sm:$0xff] }
  0x9e   : >> { %890 = vmatpush2.msra.mxu0 %v497_v40  ;;  %949 = vmatpush2.msra.mxu1 %v583_v0  ;;  %v448_v40 = vld [vmem:[#allocation3 + $0x678] sm:$0xff]  ;;  %v641_v62 = vld [vmem:[#allocation3 + $0xc80] sm:$0xff] }
  0x9f   : >> { %891 = vmatprep.subr.mxu0 %v484_v42  ;;  %950 = vmatprep.subr.mxu1 %v570_v2  ;;  %v447_v42 = vld [vmem:[#allocation3 + $0x670] sm:$0xff]  ;;  %v628_v0 = vld [vmem:[#allocation3 + $0xc18] sm:$0xff] }
  0xa0   : >> { %892 = vmatpush2.msra.mxu0 %v483_v44  ;;  %951 = vmatpush2.msra.mxu1 %v569_v4  ;;  %v434_v44 = vld [vmem:[#allocation3 + $0x608] sm:$0xff]  ;;  %v364_v2 = vld [vmem:[#allocation3 + $0x3d8] sm:$0xff]  ;;  %v363_v4 = vld [vmem:[#allocation3 + $0x3d0] sm:$0xff] }
  0xa1   : >> { %893 = vmatprep.subr.mxu0 %v470_v46  ;;  %952 = vmatprep.subr.mxu1 %v556_v6  ;;  %v433_v46 = vld [vmem:[#allocation3 + $0x600] sm:$0xff]  ;;  %v350_v6 = vld [vmem:[#allocation3 + $0x368] sm:$0xff] }
  0xa2   : >> { %894 = vmatpush2.msra.mxu0 %v469_v48  ;;  %953 = vmatpush2.msra.mxu1 %v555_v8  ;;  %v684_v48 = vld [vmem:[#allocation3 + $0xdd8] sm:$0xff]  ;;  %v349_v8 = vld [vmem:[#allocation3 + $0x360] sm:$0xff] }
  0xa3   : >> { %896 = vmatmul.mubr.f32.vlgmr.msra.gmra.mxu0 %v2009_v50  ;;  %973 = vmatprep.subr.mxu0 %v460_v51  ;;  %v683_v51 = vld [vmem:[#allocation3 + $0xdd0] sm:$0xff] }
  0xa4   : >> { %974 = vmatpush1.msra.mxu0 %v459_v52  ;;  %954 = vmatprep.subr.mxu1 %v542_v10  ;;  %v670_v52 = vld [vmem:[#allocation3 + $0xd68] sm:$0xff]  ;;  %v336_v10 = vld [vmem:[#allocation3 + $0x2f8] sm:$0xff] }
  0xa5   : >> { %975 = vmatprep.subr.mxu0 %v446_v54  ;;  %955 = vmatpush2.msra.mxu1 %v541_v12  ;;  %v669_v54 = vld [vmem:[#allocation3 + $0xd60] sm:$0xff]  ;;  %v335_v12 = vld [vmem:[#allocation3 + $0x2f0] sm:$0xff] }
  0xa6   : >> { %976 = vmatpush1.msra.mxu0 %v445_v56  ;;  %956 = vmatprep.subr.mxu1 %v528_v14  ;;  %v656_v56 = vld [vmem:[#allocation3 + $0xcf8] sm:$0xff]  ;;  %v322_v14 = vld [vmem:[#allocation3 + $0x288] sm:$0xff] }
  0xa7   : >> { %977 = vmatprep.subr.mxu0 %v432_v58  ;;  %957 = vmatpush2.msra.mxu1 %v527_v16  ;;  %v655_v58 = vld [vmem:[#allocation3 + $0xcf0] sm:$0xff]  ;;  %v321_v16 = vld [vmem:[#allocation3 + $0x280] sm:$0xff] }
  0xa8   : >> { %978 = vmatpush1.msra.mxu0 %v431_v61  ;;  %958 = vmatprep.subr.mxu1 %v514_v18  ;;  %v378_v61 = vld [vmem:[#allocation3 + $0x448] sm:$0xff]  ;;  %v308_v18 = vld [vmem:[#allocation3 + $0x218] sm:$0xff] }
  0xa9   : >> { %979 = vmatprep.subr.mxu0 %v418_v63  ;;  %959 = vmatpush2.msra.mxu1 %v513_v20  ;;  %v377_v63 = vld [vmem:[#allocation3 + $0x440] sm:$0xff]  ;;  %v307_v20 = vld [vmem:[#allocation3 + $0x210] sm:$0xff] }
  0xaa   : >> { %980 = vmatpush1.msra.mxu0 %v417_v1  ;;  %960 = vmatprep.subr.mxu1 %v500_v22  ;;  %v2018_v1 = vld [vmem:[#allocation2 + $0x8] sm:$0xff]  ;;  %v294_v22 = vld [vmem:[#allocation3 + $0x1a8] sm:$0xff] }
  0xab   : >> { %981 = vmatprep.subr.mxu0 %v404_v3  ;;  %961 = vmatpush2.msra.mxu1 %v499_v24  ;;  %v627_v3 = vld [vmem:[#allocation3 + $0xc10] sm:$0xff]  ;;  %v293_v24 = vld [vmem:[#allocation3 + $0x1a0] sm:$0xff] }
  0xac   : >> { %982 = vmatpush1.msra.mxu0 %v403_v5  ;;  %962 = vmatprep.subr.mxu1 %v486_v26  ;;  %v614_v5 = vld [vmem:[#allocation3 + $0xba8] sm:$0xff]  ;;  %v280_v26 = vld [vmem:[#allocation3 + $0x138] sm:$0xff] }
  0xad   : >> { %983 = vmatprep.subr.mxu0 %v390_v7  ;;  %963 = vmatpush2.msra.mxu1 %v485_v28  ;;  %v613_v7 = vld [vmem:[#allocation3 + $0xba0] sm:$0xff]  ;;  %v279_v28 = vld [vmem:[#allocation3 + $0x130] sm:$0xff] }
  0xae   : >> { %984 = vmatpush1.msra.mxu0 %v389_v9  ;;  %964 = vmatprep.subr.mxu1 %v472_v30  ;;  %v600_v9 = vld [vmem:[#allocation3 + $0xb38] sm:$0xff]  ;;  %v266_v30 = vld [vmem:[#allocation3 + $0xc8] sm:$0xff] }
  0xaf   : >> { %985 = vmatprep.subr.mxu0 %v376_v11  ;;  %965 = vmatpush2.msra.mxu1 %v471_v32  ;;  %v599_v11 = vld [vmem:[#allocation3 + $0xb30] sm:$0xff]  ;;  %v265_v32 = vld [vmem:[#allocation3 + $0xc0] sm:$0xff] }
  0xb0   : >> { %986 = vmatpush1.msra.mxu0 %v375_v13  ;;  %966 = vmatprep.mubr.f32.mxu1 %v2006_v60  ;;  %v249_v60 = vld [vmem:[#allocation3 + $0x40] sm:$0xff]  ;;  %v586_v13 = vld [vmem:[#allocation3 + $0xac8] sm:$0xff] }
  0xb1   : >> { %987 = vmatprep.subr.mxu0 %v362_v15  ;;  %1044 = vmatprep.subr.mxu1 %v462_v35  ;;  %v585_v15 = vld [vmem:[#allocation3 + $0xac0] sm:$0xff]  ;;  %v515_v35 = vld [vmem:[#allocation3 + $0x890] sm:$0xff] }
  0xb2   : >> { %988 = vmatpush1.msra.mxu0 %v361_v17  ;;  %967 = vmatmul.mubr.f32.vlgmr.msra.gmra.mxu1 %v2009_v50  ;;  %v406_v50 = vld [vmem:[#allocation3 + $0x528] sm:$0xff]  ;;  %v572_v17 = vld [vmem:[#allocation3 + $0xa58] sm:$0xff] }
  0xb3   : >> { %989 = vmatprep.subr.mxu0 %v348_v19  ;;  %1045 = vmatpush1.msra.mxu1 %v461_v38  ;;  %v571_v19 = vld [vmem:[#allocation3 + $0xa50] sm:$0xff]  ;;  %v686_v38 = vld [vmem:[#allocation3 + $0xde8] sm:$0xff] }
  0xb4   : >> { %990 = vmatpush1.msra.mxu0 %v347_v21  ;;  %1046 = vmatprep.subr.mxu1 %v448_v40  ;;  %v558_v21 = vld [vmem:[#allocation3 + $0x9e8] sm:$0xff]  ;;  %v685_v40 = vld [vmem:[#allocation3 + $0xde0] sm:$0xff] }
  0xb5   : >> { %991 = vmatprep.subr.mxu0 %v334_v23  ;;  %1047 = vmatpush1.msra.mxu1 %v447_v42  ;;  %v557_v23 = vld [vmem:[#allocation3 + $0x9e0] sm:$0xff]  ;;  %v672_v42 = vld [vmem:[#allocation3 + $0xd78] sm:$0xff] }
  0xb6   : >> { %992 = vmatpush1.msra.mxu0 %v333_v25  ;;  %1048 = vmatprep.subr.mxu1 %v434_v44  ;;  %v544_v25 = vld [vmem:[#allocation3 + $0x978] sm:$0xff]  ;;  %v671_v44 = vld [vmem:[#allocation3 + $0xd70] sm:$0xff] }
  0xb7   : >> { %993 = vmatprep.subr.mxu0 %v320_v27  ;;  %1049 = vmatpush1.msra.mxu1 %v433_v46  ;;  %v543_v27 = vld [vmem:[#allocation3 + $0x970] sm:$0xff]  ;;  %v658_v46 = vld [vmem:[#allocation3 + $0xd08] sm:$0xff] }
  0xb8   : >> { %994 = vmatpush1.msra.mxu0 %v319_v29  ;;  %1050 = vmatprep.subr.mxu1 %v420_v47  ;;  %v530_v29 = vld [vmem:[#allocation3 + $0x908] sm:$0xff]  ;;  %v657_v47 = vld [vmem:[#allocation3 + $0xd00] sm:$0xff] }
  0xb9   : >> { %995 = vmatprep.subr.mxu0 %v306_v31  ;;  %1051 = vmatpush1.msra.mxu1 %v419_v49  ;;  %v529_v31 = vld [vmem:[#allocation3 + $0x900] sm:$0xff]  ;;  %v463_v49 = vld [vmem:[#allocation3 + $0x6f0] sm:$0xff] }
  0xba   : >> { %996 = vmatpush1.msra.mxu0 %v305_v33  ;;  %1052 = vmatprep.subr.mxu1 %v406_v50  ;;  %v516_v33 = vld [vmem:[#allocation3 + $0x898] sm:$0xff]  ;;  %v450_v50 = vld [vmem:[#allocation3 + $0x688] sm:$0xff] }
  0xbb   : >> { %997 = vmatprep.subr.mxu0 %v292_v34  ;;  %1053 = vmatpush1.msra.mxu1 %v405_v53  ;;  %v252_v34 = vld [vmem:[#allocation3 + $0x58] sm:$0xff]  ;;  %v2021_v53 = vld [vmem:[#allocation2] sm:$0xff] }
  0xbc   : >> { %998 = vmatpush1.msra.mxu0 %v291_v36  ;;  %1054 = vmatprep.subr.mxu1 %v392_v55  ;;  %v251_v36 = vld [vmem:[#allocation3 + $0x50] sm:$0xff]  ;;  %v630_v55 = vld [vmem:[#allocation3 + $0xc28] sm:$0xff] }
  0xbd   : >> { %999 = vmatprep.subr.mxu0 %v278_v37  ;;  %1055 = vmatpush1.msra.mxu1 %v391_v57  ;;  %v502_v37 = vld [vmem:[#allocation3 + $0x828] sm:$0xff]  ;;  %v629_v57 = vld [vmem:[#allocation3 + $0xc20] sm:$0xff] }
  0xbe   : >> { %1000 = vmatpush1.msra.mxu0 %v277_v39  ;;  %1037 = vmatprep.mubr.f32.mxu0 %v2018_v1  ;;  %v501_v39 = vld [vmem:[#allocation3 + $0x820] sm:$0xff] }
  0xbf   : >> { %1001 = vmatprep.subr.mxu0 %v264_v41  ;;  %1056 = vmatprep.subr.mxu1 %v378_v61  ;;  %v488_v41 = vld [vmem:[#allocation3 + $0x7b8] sm:$0xff]  ;;  %v422_v61 = vld [vmem:[#allocation3 + $0x5a8] sm:$0xff] }
  0xc0   : >> { %1002 = vmatpush1.msra.mxu0 %v263_v43  ;;  %1057 = vmatpush1.msra.mxu1 %v377_v63  ;;  %v487_v43 = vld [vmem:[#allocation3 + $0x7b0] sm:$0xff]  ;;  %v421_v63 = vld [vmem:[#allocation3 + $0x5a0] sm:$0xff] }
  0xc1   : >> { %1003 = vmatprep.subr.mxu0 %v250_v45  ;;  %1058 = vmatprep.subr.mxu1 %v364_v2  ;;  %v474_v45 = vld [vmem:[#allocation3 + $0x748] sm:$0xff]  ;;  %v408_v2 = vld [vmem:[#allocation3 + $0x538] sm:$0xff] }
  0xc2   : >> { %1004 = vmatpush1.msra.mxu0 %v249_v60  ;;  %1059 = vmatpush1.msra.mxu1 %v363_v4  ;;  %v473_v60 = vld [vmem:[#allocation3 + $0x740] sm:$0xff]  ;;  %v407_v4 = vld [vmem:[#allocation3 + $0x530] sm:$0xff] }
  0xc3   : >> { %1005 = vmatprep.subr.mxu0 %v684_v48  ;;  %1060 = vmatprep.subr.mxu1 %v350_v6  ;;  %v464_v48 = vld [vmem:[#allocation3 + $0x6f8] sm:$0xff]  ;;  %v394_v6 = vld [vmem:[#allocation3 + $0x4c8] sm:$0xff] }
  0xc4   : >> { %1006 = vmatpush2.msra.mxu0 %v683_v51  ;;  %1061 = vmatpush1.msra.mxu1 %v349_v8  ;;  %v644_v51 = vld [vmem:[#allocation3 + $0xc98] sm:$0xff]  ;;  %v393_v8 = vld [vmem:[#allocation3 + $0x4c0] sm:$0xff] }
  0xc5   : >> { %1007 = vmatprep.subr.mxu0 %v670_v52  ;;  %1062 = vmatprep.subr.mxu1 %v336_v10  ;;  %v643_v52 = vld [vmem:[#allocation3 + $0xc90] sm:$0xff]  ;;  %v380_v10 = vld [vmem:[#allocation3 + $0x458] sm:$0xff] }
  0xc6   : >> { %1008 = vmatpush2.msra.mxu0 %v669_v54  ;;  %1063 = vmatpush1.msra.mxu1 %v335_v12  ;;  %v449_v54 = vld [vmem:[#allocation3 + $0x680] sm:$0xff]  ;;  %v379_v12 = vld [vmem:[#allocation3 + $0x450] sm:$0xff] }
  0xc7   : >> { %1009 = vmatprep.subr.mxu0 %v656_v56  ;;  %1064 = vmatprep.subr.mxu1 %v322_v14  ;;  %v436_v56 = vld [vmem:[#allocation3 + $0x618] sm:$0xff]  ;;  %v366_v14 = vld [vmem:[#allocation3 + $0x3e8] sm:$0xff] }
  0xc8   : >> { %1010 = vmatpush2.msra.mxu0 %v655_v58  ;;  %1065 = vmatpush1.msra.mxu1 %v321_v16  ;;  %v435_v58 = vld [vmem:[#allocation3 + $0x610] sm:$0xff]  ;;  %v365_v16 = vld [vmem:[#allocation3 + $0x3e0] sm:$0xff] }
  0xc9   : >> { %1011 = vmatprep.subr.mxu0 %v642_v59  ;;  %1066 = vmatprep.subr.mxu1 %v308_v18  ;;  %v616_v59 = vld [vmem:[#allocation3 + $0xbb8] sm:$0xff] }
  0xca   : >> { %1012 = vmatpush2.msra.mxu0 %v641_v62  ;;  %1067 = vmatpush1.msra.mxu1 %v307_v20  ;;  %v615_v62 = vld [vmem:[#allocation3 + $0xbb0] sm:$0xff]  ;;  %v352_v18 = vld [vmem:[#allocation3 + $0x378] sm:$0xff] }
  0xcb   : >> { %1013 = vmatprep.subr.mxu0 %v628_v0  ;;  %1068 = vmatprep.subr.mxu1 %v294_v22  ;;  %v602_v0 = vld [vmem:[#allocation3 + $0xb48] sm:$0xff]  ;;  %v351_v20 = vld [vmem:[#allocation3 + $0x370] sm:$0xff] }
  0xcc   : >> { %1014 = vmatpush2.msra.mxu0 %v627_v3  ;;  %1069 = vmatpush1.msra.mxu1 %v293_v24  ;;  %v601_v3 = vld [vmem:[#allocation3 + $0xb40] sm:$0xff]  ;;  %v338_v22 = vld [vmem:[#allocation3 + $0x308] sm:$0xff] }
  0xcd   : >> { %1015 = vmatprep.subr.mxu0 %v614_v5  ;;  %1070 = vmatprep.subr.mxu1 %v280_v26  ;;  %v588_v5 = vld [vmem:[#allocation3 + $0xad8] sm:$0xff]  ;;  %v337_v24 = vld [vmem:[#allocation3 + $0x300] sm:$0xff] }
  0xce   : >> { %1016 = vmatpush2.msra.mxu0 %v613_v7  ;;  %1071 = vmatpush1.msra.mxu1 %v279_v28  ;;  %v587_v7 = vld [vmem:[#allocation3 + $0xad0] sm:$0xff]  ;;  %v324_v26 = vld [vmem:[#allocation3 + $0x298] sm:$0xff] }
  0xcf   : >> { %1017 = vmatprep.subr.mxu0 %v600_v9  ;;  %1072 = vmatprep.subr.mxu1 %v266_v30  ;;  %v574_v9 = vld [vmem:[#allocation3 + $0xa68] sm:$0xff]  ;;  %v323_v28 = vld [vmem:[#allocation3 + $0x290] sm:$0xff] }
  0xd0   : >> { %1018 = vmatpush2.msra.mxu0 %v599_v11  ;;  %1073 = vmatpush1.msra.mxu1 %v265_v32  ;;  %v573_v11 = vld [vmem:[#allocation3 + $0xa60] sm:$0xff]  ;;  %v310_v30 = vld [vmem:[#allocation3 + $0x228] sm:$0xff] }
  0xd1   : >> { %1019 = vmatprep.subr.mxu0 %v586_v13  ;;  %1074 = vmatprep.subr.mxu1 %v252_v34  ;;  %v560_v13 = vld [vmem:[#allocation3 + $0x9f8] sm:$0xff]  ;;  %v309_v32 = vld [vmem:[#allocation3 + $0x220] sm:$0xff] }
  0xd2   : >> { %1020 = vmatpush2.msra.mxu0 %v585_v15  ;;  %1075 = vmatpush1.msra.mxu1 %v251_v36  ;;  %v559_v15 = vld [vmem:[#allocation3 + $0x9f0] sm:$0xff]  ;;  %v296_v34 = vld [vmem:[#allocation3 + $0x1b8] sm:$0xff] }
  0xd3   : >> { %1021 = vmatprep.subr.mxu0 %v572_v17  ;;  %1076 = vmatprep.subr.mxu1 %v686_v38  ;;  %v546_v17 = vld [vmem:[#allocation3 + $0x988] sm:$0xff]  ;;  %v295_v36 = vld [vmem:[#allocation3 + $0x1b0] sm:$0xff] }
  0xd4   : >> { %1022 = vmatpush2.msra.mxu0 %v571_v19  ;;  %1077 = vmatpush2.msra.mxu1 %v685_v40  ;;  %v545_v19 = vld [vmem:[#allocation3 + $0x980] sm:$0xff]  ;;  %v282_v38 = vld [vmem:[#allocation3 + $0x148] sm:$0xff] }
  0xd5   : >> { %1023 = vmatprep.subr.mxu0 %v558_v21  ;;  %1078 = vmatprep.subr.mxu1 %v672_v42  ;;  %v532_v21 = vld [vmem:[#allocation3 + $0x918] sm:$0xff]  ;;  %v281_v40 = vld [vmem:[#allocation3 + $0x140] sm:$0xff]  ;;  %v267_v42 = vld [vmem:[#allocation3 + $0xd0] sm:$0xff] }
  0xd6   : >> { %1024 = vmatpush2.msra.mxu0 %v557_v23  ;;  %1079 = vmatpush2.msra.mxu1 %v671_v44  ;;  %v531_v23 = vld [vmem:[#allocation3 + $0x910] sm:$0xff]  ;;  %v253_v44 = vld [vmem:[#allocation3 + $0x60] sm:$0xff] }
  0xd7   : >> { %1025 = vmatprep.subr.mxu0 %v544_v25  ;;  %1080 = vmatprep.subr.mxu1 %v658_v46  ;;  %v518_v25 = vld [vmem:[#allocation3 + $0x8a8] sm:$0xff]  ;;  %v687_v46 = vld [vmem:[#allocation3 + $0xdf0] sm:$0xff] }
  0xd8   : >> { %1026 = vmatpush2.msra.mxu0 %v543_v27  ;;  %1081 = vmatpush2.msra.mxu1 %v657_v47  ;;  %v517_v27 = vld [vmem:[#allocation3 + $0x8a0] sm:$0xff]  ;;  %v674_v47 = vld [vmem:[#allocation3 + $0xd88] sm:$0xff] }
  0xd9   : >> { %1027 = vmatprep.subr.mxu0 %v530_v29  ;;  %1082 = vmatprep.subr.mxu1 %v644_v51  ;;  %v504_v29 = vld [vmem:[#allocation3 + $0x838] sm:$0xff]  ;;  %v659_v51 = vld [vmem:[#allocation3 + $0xd10] sm:$0xff] }
  0xda   : >> { %1028 = vmatpush2.msra.mxu0 %v529_v31  ;;  %1083 = vmatpush2.msra.mxu1 %v643_v52  ;;  %v503_v31 = vld [vmem:[#allocation3 + $0x830] sm:$0xff]  ;;  %v645_v52 = vld [vmem:[#allocation3 + $0xca0] sm:$0xff] }
  0xdb   : >> { %1029 = vmatprep.subr.mxu0 %v516_v33  ;;  %1084 = vmatprep.subr.mxu1 %v630_v55  ;;  %v490_v33 = vld [vmem:[#allocation3 + $0x7c8] sm:$0xff] }
  0xdc   : >> { %1030 = vmatpush2.msra.mxu0 %v515_v35  ;;  %1085 = vmatpush2.msra.mxu1 %v629_v57  ;;  %v489_v35 = vld [vmem:[#allocation3 + $0x7c0] sm:$0xff]  ;;  %v618_v55 = vld [vmem:[#allocation3 + $0xbc8] sm:$0xff]  ;;  %v604_v57 = vld [vmem:[#allocation3 + $0xb58] sm:$0xff] }
  0xdd   : >> { %1031 = vmatprep.subr.mxu0 %v502_v37  ;;  %1086 = vmatprep.subr.mxu1 %v616_v59  ;;  %v476_v37 = vld [vmem:[#allocation3 + $0x758] sm:$0xff]  ;;  %v590_v59 = vld [vmem:[#allocation3 + $0xae8] sm:$0xff] }
  0xde   : >> { %1032 = vmatpush2.msra.mxu0 %v501_v39  ;;  %1087 = vmatpush2.msra.mxu1 %v615_v62  ;;  %v475_v39 = vld [vmem:[#allocation3 + $0x750] sm:$0xff]  ;;  %v576_v62 = vld [vmem:[#allocation3 + $0xa78] sm:$0xff] }
  0xdf   : >> { %1033 = vmatprep.subr.mxu0 %v488_v41  ;;  %1088 = vmatprep.subr.mxu1 %v602_v0  ;;  %v268_v41 = vld [vmem:[#allocation3 + $0xd8] sm:$0xff]  ;;  %v562_v0 = vld [vmem:[#allocation3 + $0xa08] sm:$0xff] }
  0xe0   : >> { %1034 = vmatpush2.msra.mxu0 %v487_v43  ;;  %1089 = vmatpush2.msra.mxu1 %v601_v3  ;;  %v254_v43 = vld [vmem:[#allocation3 + $0x68] sm:$0xff]  ;;  %v548_v3 = vld [vmem:[#allocation3 + $0x998] sm:$0xff] }
  0xe1   : >> { %1035 = vmatprep.subr.mxu0 %v474_v45  ;;  %1090 = vmatprep.subr.mxu1 %v588_v5  ;;  %v688_v45 = vld [vmem:[#allocation3 + $0xdf8] sm:$0xff]  ;;  %v534_v5 = vld [vmem:[#allocation3 + $0x928] sm:$0xff] }
  0xe2   : >> { %1036 = vmatpush2.msra.mxu0 %v473_v60  ;;  %1091 = vmatpush2.msra.mxu1 %v587_v7  ;;  %v1934_v60 = vmov 0.0   ;;  %v520_v7 = vld [vmem:[#allocation3 + $0x8b8] sm:$0xff] }
  0xe3   : >> { %1038 = vmatmul.mubr.f32.vlgmr.msra.gmra.mxu0 %v2021_v53  ;;  %1115 = vmatprep.subr.mxu0 %v464_v48  ;;  %v673_v48 = vld [vmem:[#allocation3 + $0xd80] sm:$0xff] }
  0xe4   : >> { %1116 = vmatpush1.msra.mxu0 %v463_v49  ;;  %1092 = vmatprep.subr.mxu1 %v574_v9  ;;  %v660_v49 = vld [vmem:[#allocation3 + $0xd18] sm:$0xff]  ;;  %v506_v9 = vld [vmem:[#allocation3 + $0x848] sm:$0xff] }
  0xe5   : >> { %1117 = vmatprep.subr.mxu0 %v450_v50  ;;  %1093 = vmatpush2.msra.mxu1 %v573_v11  ;;  %v646_v50 = vld [vmem:[#allocation3 + $0xca8] sm:$0xff]  ;;  %v492_v11 = vld [vmem:[#allocation3 + $0x7d8] sm:$0xff] }
  0xe6   : >> { %1118 = vmatpush1.msra.mxu0 %v449_v54  ;;  %1094 = vmatprep.subr.mxu1 %v560_v13  ;;  %v632_v54 = vld [vmem:[#allocation3 + $0xc38] sm:$0xff]  ;;  %v478_v13 = vld [vmem:[#allocation3 + $0x768] sm:$0xff] }
  0xe7   : >> { %1119 = vmatprep.subr.mxu0 %v436_v56  ;;  %1095 = vmatpush2.msra.mxu1 %v559_v15  ;;  %v617_v56 = vld [vmem:[#allocation3 + $0xbc0] sm:$0xff] }
  0xe8   : >> { %1120 = vmatpush1.msra.mxu0 %v435_v58  ;;  %1096 = vmatprep.subr.mxu1 %v546_v17  ;;  %v603_v58 = vld [vmem:[#allocation3 + $0xb50] sm:$0xff] }
  0xe9   : >> { %1121 = vmatprep.subr.mxu0 %v422_v61  ;;  %1097 = vmatpush2.msra.mxu1 %v545_v19  ;;  %v589_v61 = vld [vmem:[#allocation3 + $0xae0] sm:$0xff]  ;;  %v1188_v17 = vld [vmem:[%s2079_s2] sm:$0x3f] }
  0xea   : >> { %1122 = vmatpush1.msra.mxu0 %v421_v63  ;;  %1098 = vmatprep.subr.mxu1 %v532_v21  ;;  %v575_v63 = vld [vmem:[#allocation3 + $0xa70] sm:$0xff] }
  0xeb   : >> { %1123 = vmatprep.subr.mxu0 %v408_v2  ;;  %1099 = vmatpush2.msra.mxu1 %v531_v23  ;;  %v561_v2 = vld [vmem:[#allocation3 + $0xa00] sm:$0xff] }
  0xec   : >> { %1124 = vmatpush1.msra.mxu0 %v407_v4  ;;  %1100 = vmatprep.subr.mxu1 %v518_v25  ;;  %v547_v4 = vld [vmem:[#allocation3 + $0x990] sm:$0xff]  ;;  %v1835_v25 = vld [vmem:[%s2079_s2 + $0x18] sm:$0x3f] }
  0xed   : >> { %1125 = vmatprep.subr.mxu0 %v394_v6  ;;  %1101 = vmatpush2.msra.mxu1 %v517_v27  ;;  %v533_v6 = vld [vmem:[#allocation3 + $0x920] sm:$0xff] }
  0xee   : >> { %1126 = vmatpush1.msra.mxu0 %v393_v8  ;;  %1102 = vmatprep.subr.mxu1 %v504_v29  ;;  %v519_v8 = vld [vmem:[#allocation3 + $0x8b0] sm:$0xff] }
  0xef   : >> { %1127 = vmatprep.subr.mxu0 %v380_v10  ;;  %1103 = vmatpush2.msra.mxu1 %v503_v31  ;;  %v505_v10 = vld [vmem:[#allocation3 + $0x840] sm:$0xff]  ;;  %v1839_v31 = vld [vmem:[%s2079_s2 + $0x28] sm:$0x3f] }
  0xf0   : >> { %1128 = vmatpush1.msra.mxu0 %v379_v12  ;;  %1104 = vmatprep.subr.mxu1 %v490_v33  ;;  %v491_v12 = vld [vmem:[#allocation3 + $0x7d0] sm:$0xff] }
  0xf1   : >> { %1129 = vmatprep.subr.mxu0 %v366_v14  ;;  %1105 = vmatpush2.msra.mxu1 %v489_v35  ;;  %v477_v14 = vld [vmem:[#allocation3 + $0x760] sm:$0xff] }
  0xf2   : >> { %1130 = vmatpush1.msra.mxu0 %v365_v16  ;;  %1106 = vmatprep.subr.mxu1 %v476_v37 }
  0xf3   : >> { %1131 = vmatprep.subr.mxu0 %v352_v18  ;;  %1107 = vmatpush2.msra.mxu1 %v475_v39 }
  0xf4   : >> { %1132 = vmatpush1.msra.mxu0 %v351_v20  ;;  %1108 = vmatprep.mubr.f32.mxu1 %v2018_v1  ;;  %v1831_v20 = vld [vmem:[%s2079_s2 + $0x8] sm:$0x3f] }
  0xf5   : >> { %1133 = vmatprep.subr.mxu0 %v338_v22  ;;  %1109 = vmatmul.mubr.f32.vlgmr.msra.gmra.mxu1 %v2021_v53  ;;  %v1833_v22 = vld [vmem:[%s2079_s2 + $0x10] sm:$0x3f] }
  0xf6   : >> { %1134 = vmatpush1.msra.mxu0 %v337_v24  ;;  %1179 = vmatprep.mubr.f32.mxu0 %v2018_v1  ;;  %v631_v1 = vld [vmem:[#allocation3 + $0xc30] sm:$0xff] }
  0xf7   : >> { %1135 = vmatprep.subr.mxu0 %v324_v26  ;;  %1257 = vmatprep.mubr.f32.mxu1 %v1934_v60 }
  0xf8   : >> { %1136 = vmatpush1.msra.mxu0 %v323_v28  ;;  %v1837_v28 = vld [vmem:[%s2079_s2 + $0x20] sm:$0x3f] }
  0xf9   : >> { %1137 = vmatprep.subr.mxu0 %v310_v30 }
  0xfa   : >> { %1138 = vmatpush1.msra.mxu0 %v309_v32 }
  0xfb   : >> { %1139 = vmatprep.subr.mxu0 %v296_v34  ;;  %v1841_v34 = vld [vmem:[%s2079_s2 + $0x30] sm:$0x3f] }
  0xfc   : >> { %1140 = vmatpush1.msra.mxu0 %v295_v36 }
  0xfd   : >> { %1141 = vmatprep.subr.mxu0 %v282_v38 }
  0xfe   : >> { %1142 = vmatpush1.msra.mxu0 %v281_v40 }
  0xff   : >> { %1143 = vmatprep.subr.mxu0 %v268_v41  ;;  %v1186_v41 = vld [vmem:[%s2080_s3] sm:$0x3f] }
 0x100   : >> { %1144 = vmatpush1.msra.mxu0 %v267_v42  ;;  %v1187_v42 = vld [vmem:[%s2080_s3 + $0x8] sm:$0x3f] }
 0x101   : >> { %1145 = vmatprep.subr.mxu0 %v254_v43 }
 0x102   : >> { %1146 = vmatpush1.msra.mxu0 %v253_v44 }
 0x103   : >> { %1147 = vmatprep.subr.mxu0 %v688_v45 }
 0x104   : >> { %1148 = vmatpush2.msra.mxu0 %v687_v46 }
 0x105   : >> { %1149 = vmatprep.subr.mxu0 %v674_v47 }
 0x106   : >> { %1150 = vmatpush2.msra.mxu0 %v673_v48 }
 0x107   : >> { %1151 = vmatprep.subr.mxu0 %v660_v49 }
 0x108   : >> { %1152 = vmatpush2.msra.mxu0 %v659_v51 }
 0x109   : >> { %1153 = vmatprep.subr.mxu0 %v646_v50 }
 0x10a   : >> { %1154 = vmatpush2.msra.mxu0 %v645_v52 }
 0x10b   : >> { %1155 = vmatprep.subr.mxu0 %v632_v54 }
 0x10c   : >> { %1156 = vmatpush2.msra.mxu0 %v631_v1 }
 0x10d   : >> { %1157 = vmatprep.subr.mxu0 %v618_v55 }
 0x10e   : >> { %1158 = vmatpush2.msra.mxu0 %v617_v56 }
 0x10f   : >> { %1159 = vmatprep.subr.mxu0 %v604_v57 }
 0x110   : >> { %1160 = vmatpush2.msra.mxu0 %v603_v58 }
 0x111   : >> { %1161 = vmatprep.subr.mxu0 %v590_v59 }
 0x112   : >> { %1162 = vmatpush2.msra.mxu0 %v589_v61 }
 0x113   : >> { %1163 = vmatprep.subr.mxu0 %v576_v62 }
 0x114   : >> { %1164 = vmatpush2.msra.mxu0 %v575_v63 }
 0x115   : >> { %1165 = vmatprep.subr.mxu0 %v562_v0 }
 0x116   : >> { %1166 = vmatpush2.msra.mxu0 %v561_v2 }
 0x117   : >> { %1167 = vmatprep.subr.mxu0 %v548_v3 }
 0x118   : >> { %1168 = vmatpush2.msra.mxu0 %v547_v4 }
 0x119   : >> { %1169 = vmatprep.subr.mxu0 %v534_v5 }
 0x11a   : >> { %1170 = vmatpush2.msra.mxu0 %v533_v6 }
 0x11b   : >> { %1171 = vmatprep.subr.mxu0 %v520_v7 }
 0x11c   : >> { %1172 = vmatpush2.msra.mxu0 %v519_v8 }
 0x11d   : >> { %1173 = vmatprep.subr.mxu0 %v506_v9 }
 0x11e   : >> { %1174 = vmatpush2.msra.mxu0 %v505_v10 }
 0x11f   : >> { %1175 = vmatprep.subr.mxu0 %v492_v11 }
 0x120   : >> { %1176 = vmatpush2.msra.mxu0 %v491_v12 }
 0x121   : >> { %1177 = vmatprep.subr.mxu0 %v478_v13 }
 0x122   : >> { %1178 = vmatpush2.msra.mxu0 %v477_v14 }
 0x123   : >> { %v755_v15 = vpop.f32.mrf.mxu0  ;;  %1180 = vmatmul.mubr.f32.vlgmr.msra.gmra.mxu0 %v2021_v53 }
 0x125   : >> { %v757_v16 = vpop.f32.mrf.mxu0 }
 0x126   : >> { %1223 = vmatprep.subr.mxu1 %v757_v16 }
 0x127   : >> { %1224 = vmatpush1.msra.mxu1 %v755_v15 }
 0x128   : >> { %1830 = vmatmul.mubr.msk.f32.vlgmr.msra.gmra.mxu1 %vm1189_vm1, %v1188_v17 }
 0x129   : >> { %1335 = vmatprep.mubr.f32.mxu1 %v1934_v60 }
 0x12e   : >> { %v826_v18 = vpop.f32.mrf.mxu1 }
 0x130   : >> { %v828_v19 = vpop.f32.mrf.mxu1 }
 0x131   : >> { %1301 = vmatprep.subr.mxu1 %v828_v19 }
 0x132   : >> { %1302 = vmatpush1.msra.mxu1 %v826_v18 }
 0x133   : >> { %1832 = vmatmul.mubr.msk.f32.vlgmr.msra.gmra.mxu1 %vm1189_vm1, %v1831_v20 }
 0x134   : >> { %1413 = vmatprep.mubr.f32.mxu1 %v1934_v60 }
 0x163   : >> { %v897_v53 = vpop.f32.mrf.mxu0 }
 0x165   : >> { %v899_v21 = vpop.f32.mrf.mxu0 }
 0x166   : >> { %1379 = vmatprep.subr.mxu1 %v899_v21 }
 0x167   : >> { %1380 = vmatpush1.msra.mxu1 %v897_v53 }
 0x168   : >> { %1834 = vmatmul.mubr.msk.f32.vlgmr.msra.gmra.mxu1 %vm1189_vm1, %v1833_v22 }
 0x169   : >> { %1491 = vmatprep.mubr.f32.mxu1 %v1934_v60 }
 0x172   : >> { %v968_v23 = vpop.f32.mrf.mxu1 }
 0x174   : >> { %v970_v24 = vpop.f32.mrf.mxu1 }
 0x175   : >> { %1457 = vmatprep.subr.mxu1 %v970_v24 }
 0x176   : >> { %1458 = vmatpush1.msra.mxu1 %v968_v23 }
 0x177   : >> { %1836 = vmatmul.mubr.msk.f32.vlgmr.msra.gmra.mxu1 %vm1189_vm1, %v1835_v25 }
 0x178   : >> { %1569 = vmatprep.mubr.f32.mxu1 %v1934_v60 }
 0x1a3   : >> { %v1039_v26 = vpop.f32.mrf.mxu0 }
 0x1a5   : >> { %v1041_v27 = vpop.f32.mrf.mxu0 }
 0x1a6   : >> { %1535 = vmatprep.subr.mxu1 %v1041_v27 }
 0x1a7   : >> { %1536 = vmatpush1.msra.mxu1 %v1039_v26 }
 0x1a8   : >> { %1838 = vmatmul.mubr.msk.f32.vlgmr.msra.gmra.mxu1 %vm1189_vm1, %v1837_v28 }
 0x1a9   : >> { %1647 = vmatprep.mubr.f32.mxu1 %v1934_v60 }
 0x1b5   : >> { %v1110_v29 = vpop.f32.mrf.mxu1 }
 0x1b7   : >> { %v1112_v30 = vpop.f32.mrf.mxu1 }
 0x1b8   : >> { %1613 = vmatprep.subr.mxu1 %v1112_v30 }
 0x1b9   : >> { %1614 = vmatpush1.msra.mxu1 %v1110_v29 }
 0x1ba   : >> { %1840 = vmatmul.mubr.msk.f32.vlgmr.msra.gmra.mxu1 %vm1189_vm1, %v1839_v31 }
 0x1bb   : >> { %1725 = vmatprep.mubr.f32.mxu1 %v1934_v60 }
 0x1e3   : >> { %v1181_v32 = vpop.f32.mrf.mxu0 }
 0x1e5   : >> { %v1183_v33 = vpop.f32.mrf.mxu0 }
 0x1e6   : >> { %1691 = vmatprep.subr.mxu1 %v1183_v33 }
 0x1e7   : >> { %1692 = vmatpush1.msra.mxu1 %v1181_v32 }
 0x1e8   : >> { %1842 = vmatmul.mubr.msk.f32.vlgmr.msra.gmra.mxu1 %vm1189_vm1, %v1841_v34  ;;  %v1259_v35 = vpop.f32.mrf.mxu1 }
 0x1e9   : >> { %v1264_v44 = vadd.f32 %v1259_v35, %v1186_v41 }
 0x1ea   : >> { %v1261_v36 = vpop.f32.mrf.mxu1 }
 0x1eb   : >> { %v1265_v45 = vadd.f32 %v1261_v36, %v1187_v42 }
 0x1f3   : >> { %v1337_v37 = vpop.f32.mrf.mxu1 }
 0x1f4   : >> { %v1342_v60 = vadd.f32 %v1337_v37, %v1264_v44 }
 0x1f5   : >> { %v1339_v38 = vpop.f32.mrf.mxu1 }
 0x1f6   : >> { %v1343_v47 = vadd.f32 %v1339_v38, %v1265_v45 }
 0x228   : >> { %v1415_v39 = vpop.f32.mrf.mxu1 }
 0x229   : >> { %v1420_v49 = vadd.f32 %v1415_v39, %v1342_v60 }
 0x22a   : >> { %v1417_v40 = vpop.f32.mrf.mxu1 }
 0x22b   : >> { %v1421_v51 = vadd.f32 %v1417_v40, %v1343_v47 }
 0x237   : >> { %v1493_v43 = vpop.f32.mrf.mxu1 }
 0x238   : >> { %v1498_v52 = vadd.f32 %v1493_v43, %v1420_v49 }
 0x239   : >> { %v1495_v46 = vpop.f32.mrf.mxu1 }
 0x23a   : >> { %v1499_v54 = vadd.f32 %v1495_v46, %v1421_v51 }
 0x268   : >> { %v1571_v48 = vpop.f32.mrf.mxu1 }
 0x269   : >> { %v1576_v55 = vadd.f32 %v1571_v48, %v1498_v52 }
 0x26a   : >> { %v1573_v50 = vpop.f32.mrf.mxu1 }
 0x26b   : >> { %v1577_v56 = vadd.f32 %v1573_v50, %v1499_v54 }
 0x27a   : >> { %v1649_v1 = vpop.f32.mrf.mxu1 }
 0x27b   : >> { %v1654_v58 = vadd.f32 %v1649_v1, %v1576_v55 }
 0x27c   : >> { %v1651_v57 = vpop.f32.mrf.mxu1 }
 0x27d   : >> { %v1655_v61 = vadd.f32 %v1651_v57, %v1577_v56 }
 0x2a8   : >> { %v1727_v59 = vpop.f32.mrf.mxu1 }
 0x2a9   : >> { %v1732_v62 = vadd.f32 %v1727_v59, %v1654_v58  ;;  %227 = sbr.rel (!%p225_p1) target bundleno = 34 (0x22), region = 86 }
 0x2aa   : >> { %v1729_v63 = vpop.f32.mrf.mxu1 }
 0x2ab   : >> { %1736 = vst [vmem:[%s1735_s7] sm:$0x3f] %v1732_v62  ;;  %v1733_v0 = vadd.f32 %v1729_v63, %v1655_v61 }
 0x2ad   : >> { %1737 = vst [vmem:[%s1735_s7 + $0x8] sm:$0x3f] %v1733_v0 }
 0x2ae PF: > { %s15_s15 = sadd.s32 1, %s1924_s15  }
 0x2af   : > { %p12_p2 = scmp.ge.s32.totalorder %s15_s15, 4  }
 0x2b1   :  { %14 = sbr.rel (!%p12_p2) target bundleno = 1 (0x1), region = 97 }
 0x2b6   :  { %1762 = vsyncpa [#allocation4], 1 }
 0x2b7   :  { %1764 = vsyncpa [#allocation4 + $0x1], 1 }

</bundles_post_ra>
